<compile_context>
chip_gen: v6e
topology: v6e:2x2x1
jax: 0.10.0
libtpu: 0.0.40
codegen_flags: <defaults>
</compile_context>

<pallas_src>
import jax
import jax.numpy as jnp
from jax.experimental import pallas as pl
from jax.experimental.pallas import tpu as pltpu

# ---- problem sizes (small, consistent with the module) ----
N = 2
C8 = 32            # channels['8']
C16 = 64           # channels['16']
IC = 128           # inter_channels
K = 4              # num_classes
KPAD = 128         # lane-dense padded num_classes for the kernel output
H16, W16 = 8, 8    # spatial size of the '16' feature map
H8, W8 = 16, 16    # spatial size of the '8' feature map
HW16 = H16 * W16   # 64
HW8 = H8 * W8      # 256
NHW16 = N * HW16   # 128
NHW8 = N * HW8     # 512
C8A = C8 + 8       # x8 augmented width: data(32) + ones(1) + zero pad to 40
PACK_ROWS = NHW8 + IC + C8A   # 512 + 128 + 40 = 680
EPS = 1e-5


# ------------------------------------------------------------------
# Fused kernel: cbr (1x1 conv + folded BN + ReLU), scale branch
# (avg-pool -> 1x1 conv -> sigmoid), broadcast multiply, bilinear resize
# (block-diagonal kron matmul) and both classifiers — one grid step.
# ------------------------------------------------------------------
def fused_lraspp_kernel(x16_ref, x8_ref, w_comb_ref, wpack_ref, out_ref):
    # x16_ref: (NHW16, C16+1)  x8_ref: (NHW8, C8A)  out_ref: (NHW8, KPAD)
    # w_comb_ref: (C16+1, 2*IC)   wpack_ref: (PACK_ROWS, 128)

    # Stage 1: one matmul computes BOTH branches.  Lanes [0, IC) are the cbr
    # branch (BN scale folded into the weight, BN bias via the ones-column);
    # lanes [IC, 2*IC) are the per-pixel scale-branch logits.
    hz = jnp.dot(x16_ref[...], w_comb_ref[...],
                 preferred_element_type=jnp.float32)               # (NHW16, 2*IC)
    h = jnp.maximum(hz[:, :IC], 0.0)                               # (NHW16, IC)

    # Scale branch: sigmoid(mean_pix(x16) @ w_scale)
    #             = sigmoid(mean_pix(x16 @ w_scale))   (linearity of the conv)
    # The (N, HW16, IC) reshape is free: HW16 = 64 is a multiple of 8.
    s = jax.nn.sigmoid(jnp.mean(hz[:, IC:].reshape(N, HW16, IC), axis=1))  # (N, IC)

    # Per-batch broadcast multiply via the same free reshape (one VPU multiply).
    xm = (h.reshape(N, HW16, IC) * s[:, None, :]).reshape(NHW16, IC)

    # Static views into the packed constant slab (sublane-aligned offsets).
    m_bd = wpack_ref[pl.ds(0, NHW8), :]                            # (NHW8, NHW16)
    w_high = wpack_ref[pl.ds(NHW8, IC), :]                         # (IC, KPAD)
    w_low = wpack_ref[pl.ds(NHW8 + IC, C8A), :]                    # (C8A, KPAD)

    # high_classifier before the (linear) resize:
    #   M_bd @ (xm @ W_high) == resize(xm) @ W_high  (block-diag over batch).
    v = jnp.dot(xm, w_high, preferred_element_type=jnp.float32)    # (NHW16, KPAD)
    up = jnp.dot(m_bd, v, preferred_element_type=jnp.float32)      # (NHW8, KPAD)
    low = jnp.dot(x8_ref[...], w_low,                              # biases folded
                  preferred_element_type=jnp.float32)              # (NHW8, KPAD)

    out_ref[...] = up + low                                        # one dense vst


# ------------------------------------------------------------------
# Glue: interpolation matrices (PyTorch bilinear, align_corners=False)
# ------------------------------------------------------------------
def interp_matrix(out_size, in_size):
    d = jnp.arange(out_size, dtype=jnp.float32)
    src = (d + 0.5) * (in_size / out_size) - 0.5
    src = jnp.clip(src, 0.0, in_size - 1.0)
    i0 = jnp.floor(src).astype(jnp.int32)
    i1 = jnp.minimum(i0 + 1, in_size - 1)
    w1 = src - i0.astype(jnp.float32)
    w0 = 1.0 - w1
    return (w0[:, None] * jax.nn.one_hot(i0, in_size, dtype=jnp.float32)
            + w1[:, None] * jax.nn.one_hot(i1, in_size, dtype=jnp.float32))


@jax.jit
def exp2_lraspp_forward(x8, x16, p, Ih, Iw):
    """x8: (N,H8,W8,C8), x16: (N,H16,W16,C16) — NHWC. Returns (N,H8,W8,K)."""
    # Fold eval-mode BatchNorm into the 1x1 conv weight + a bias row.
    bn_scale = p["gamma"] / jnp.sqrt(p["rvar"] + EPS)
    w_cbr_folded = p["w_cbr"] * bn_scale[None, :]                    # (C16, IC)
    bn_bias = p["beta"] - p["rmean"] * bn_scale                      # (IC,)

    # Combined stage-1 weight (C16+1, 2*IC): [cbr | scale] along lanes, with
    # an extra row (matched by the ones-column in x16) carrying the BN bias
    # (zero for the scale half, which has no bias).
    w_comb = jnp.zeros((C16 + 1, 2 * IC), jnp.float32)
    w_comb = w_comb.at[:C16, :IC].set(w_cbr_folded)
    w_comb = w_comb.at[C16, :IC].set(bn_bias)
    w_comb = w_comb.at[:C16, IC:].set(p["w_scale"])

    # Lane-dense classifier weights (pad K=4 -> 128); the combined bias
    # (b_low + b_high) rides in via the x8 ones-column row.
    w_high_pad = jnp.zeros((IC, KPAD), jnp.float32).at[:, :K].set(p["w_high"])
    w_low_aug = jnp.zeros((C8A, KPAD), jnp.float32)
    w_low_aug = w_low_aug.at[:C8, :K].set(p["w_low"])
    w_low_aug = w_low_aug.at[C8, :K].set(p["b_low"] + p["b_high"])

    # Block-diagonal bilinear-resize matrix over the whole batch
    # (row-major h*W+w flattening, batch-major rows).
    M_bd = jnp.kron(jnp.eye(N, dtype=jnp.float32),
                    jnp.kron(Ih, Iw))                                # (NHW8, NHW16)

    # Pack the three 128-lane constants into one input -> one DMA.
    wpack = jnp.concatenate([M_bd, w_high_pad, w_low_aug], axis=0)   # (680, 128)

    # Wrapper-side flatten + ones-column augmentation (all fused under jit).
    x16_aug = jnp.concatenate(
        [x16.reshape(NHW16, C16), jnp.ones((NHW16, 1), jnp.float32)], axis=1)
    x8_aug = jnp.concatenate(
        [x8.reshape(NHW8, C8), jnp.ones((NHW8, 1), jnp.float32),
         jnp.zeros((NHW8, C8A - C8 - 1), jnp.float32)], axis=1)

    out_flat = pl.pallas_call(
        fused_lraspp_kernel,
        out_shape=jax.ShapeDtypeStruct((NHW8, KPAD), jnp.float32),
        grid_spec=pltpu.PrefetchScalarGridSpec(
            num_scalar_prefetch=0,
            grid=(1,),
            in_specs=[
                pl.BlockSpec((NHW16, C16 + 1), lambda i: (0, 0)),    # x16_aug
                pl.BlockSpec((NHW8, C8A), lambda i: (0, 0)),         # x8_aug
                pl.BlockSpec((C16 + 1, 2 * IC), lambda i: (0, 0)),   # w_comb
                pl.BlockSpec((PACK_ROWS, KPAD), lambda i: (0, 0)),   # wpack
            ],
            out_specs=pl.BlockSpec((NHW8, KPAD), lambda i: (0, 0)),
        ),
        compiler_params=pltpu.CompilerParams(
            dimension_semantics=("arbitrary",)),
    )(x16_aug, x8_aug, w_comb, wpack)

    return out_flat[:, :K].reshape(N, H8, W8, K)


# ------------------------------------------------------------------
# Pure-JAX reference (same math, no kernel folding)
# ------------------------------------------------------------------
def reference(x8, x16, p, Ih, Iw):
    h = jnp.einsum("nhwc,cd->nhwd", x16, p["w_cbr"])
    h = (h - p["rmean"]) * (p["gamma"] / jnp.sqrt(p["rvar"] + EPS)) + p["beta"]
    h = jnp.maximum(h, 0.0)
    mean = jnp.mean(x16, axis=(1, 2))
    s = jax.nn.sigmoid(mean @ p["w_scale"])
    xm = h * s[:, None, None, :]
    xi = jnp.einsum("hH,nHWc->nhWc", Ih, xm)
    xi = jnp.einsum("wW,nhWc->nhwc", Iw, xi)
    return (jnp.einsum("nhwc,ck->nhwk", x8, p["w_low"]) + p["b_low"]
            + jnp.einsum("nhwc,ck->nhwk", xi, p["w_high"]) + p["b_high"])


if __name__ == "__main__":
    key = jax.random.PRNGKey(0)
    keys = jax.random.split(key, 12)

    # Inputs.  PyTorch equivalent: x8 (N,C8,H8,W8), x16 (N,C16,H16,W16) -> NHWC.
    x8_nchw = jax.random.normal(keys[0], (N, C8, H8, W8), jnp.float32)
    x16_nchw = jax.random.normal(keys[1], (N, C16, H16, W16), jnp.float32)
    x8 = jnp.transpose(x8_nchw, (0, 2, 3, 1))
    x16 = jnp.transpose(x16_nchw, (0, 2, 3, 1))

    # Deterministic synthetic parameters (1x1 conv weights stored as (in, out)).
    params = {
        "w_cbr": 0.1 * jax.random.normal(keys[2], (C16, IC), jnp.float32),
        "gamma": 1.0 + 0.1 * jax.random.normal(keys[3], (IC,), jnp.float32),
        "beta": 0.1 * jax.random.normal(keys[4], (IC,), jnp.float32),
        "rmean": 0.1 * jax.random.normal(keys[5], (IC,), jnp.float32),
        "rvar": jnp.abs(jax.random.normal(keys[6], (IC,), jnp.float32)) + 0.5,
        "w_scale": 0.1 * jax.random.normal(keys[7], (C16, IC), jnp.float32),
        "w_low": 0.1 * jax.random.normal(keys[8], (C8, K), jnp.float32),
        "b_low": 0.1 * jax.random.normal(keys[9], (K,), jnp.float32),
        "w_high": 0.1 * jax.random.normal(keys[10], (IC, K), jnp.float32),
        "b_high": 0.1 * jax.random.normal(keys[11], (K,), jnp.float32),
    }

    Ih = interp_matrix(H8, H16)
    Iw = interp_matrix(W8, W16)

    out = exp2_lraspp_forward(x8, x16, params, Ih, Iw)
    out = jax.block_until_ready(out)

    ref = reference(x8, x16, params, Ih, Iw)
    assert out.shape == (N, H8, W8, K)
    assert jnp.allclose(out, ref, atol=1e-4, rtol=1e-4), float(jnp.max(jnp.abs(out - ref)))

    print("KERNEL_OK")
</pallas_src>

<mosaic_0001>
module attributes {stable_mosaic.version = 11 : i64} {
  func.func @fused_lraspp_kernel(%arg0: i32, %arg1: memref<128x65xf32, #tpu.memory_space<vmem>>, %arg2: memref<512x40xf32, #tpu.memory_space<vmem>>, %arg3: memref<65x256xf32, #tpu.memory_space<vmem>>, %arg4: memref<680x128xf32, #tpu.memory_space<vmem>>, %arg5: memref<512x128xf32, #tpu.memory_space<vmem>>) attributes {dimension_semantics = [#tpu.dimension_semantics<arbitrary>], iteration_bounds = array<i64: 1>, scalar_prefetch = 0 : i64, scratch_operands = 0 : i64, tpu.core_type = #tpu.core_type<tc>, window_params = [{pipeline_mode = #tpu.pipeline_mode<synchronous>, transform_indices = @transform_0, window_bounds = array<i64: 128, 65>}, {pipeline_mode = #tpu.pipeline_mode<synchronous>, transform_indices = @transform_1, window_bounds = array<i64: 512, 40>}, {pipeline_mode = #tpu.pipeline_mode<synchronous>, transform_indices = @transform_2, window_bounds = array<i64: 65, 256>}, {pipeline_mode = #tpu.pipeline_mode<synchronous>, transform_indices = @transform_3, window_bounds = array<i64: 680, 128>}, {pipeline_mode = #tpu.pipeline_mode<synchronous>, transform_indices = @transform_4, window_bounds = array<i64: 512, 128>}]} {
    %c0 = arith.constant 0 : index
    %c0_0 = arith.constant 0 : index
    %0 = vector.load %arg1[%c0, %c0_0] : memref<128x65xf32, #tpu.memory_space<vmem>>, vector<128x65xf32>
    %c0_1 = arith.constant 0 : index
    %c0_2 = arith.constant 0 : index
    %1 = vector.load %arg3[%c0_1, %c0_2] : memref<65x256xf32, #tpu.memory_space<vmem>>, vector<65x256xf32>
    %cst = arith.constant dense<0.000000e+00> : vector<128x256xf32>
    %2 = tpu.matmul %0, %1, %cst {dimension_numbers = #tpu.dot_dimension_numbers<[1], [0], [0], [1], [0, 0, 1, 1], [], []>} : vector<128x65xf32>, vector<65x256xf32>, vector<128x256xf32> -> vector<128x256xf32>
    %3 = vector.extract_strided_slice %2 {offsets = [0, 0], sizes = [128, 128], strides = [1, 1]} : vector<128x256xf32> to vector<128x128xf32>
    %cst_3 = arith.constant 0.000000e+00 : f32
    %4 = vector.broadcast %cst_3 : f32 to vector<128x128xf32>
    %5 = arith.maximumf %3, %4 : vector<128x128xf32>
    %6 = vector.extract_strided_slice %2 {offsets = [0, 128], sizes = [128, 128], strides = [1, 1]} : vector<128x256xf32> to vector<128x128xf32>
    %7 = vector.shape_cast %6 : vector<128x128xf32> to vector<2x64x128xf32>
    %cst_4 = arith.constant dense<0.000000e+00> : vector<2x128xf32>
    %8 = vector.multi_reduction <add>, %7, %cst_4 [1] : vector<2x64x128xf32> to vector<2x128xf32>
    %cst_5 = arith.constant 6.400000e+01 : f32
    %9 = vector.broadcast %cst_5 : f32 to vector<2x128xf32>
    %10 = arith.divf %8, %9 : vector<2x128xf32>
    %11 = arith.negf %10 : vector<2x128xf32>
    %12 = math.exp %11 : vector<2x128xf32>
    %cst_6 = arith.constant 1.000000e+00 : f32
    %13 = vector.broadcast %cst_6 : f32 to vector<2x128xf32>
    %14 = arith.addf %13, %12 : vector<2x128xf32>
    %15 = arith.divf %13, %14 : vector<2x128xf32>
    %16 = vector.shape_cast %5 : vector<128x128xf32> to vector<2x64x128xf32>
    %17 = vector.shape_cast %15 : vector<2x128xf32> to vector<2x1x128xf32>
    %18 = vector.broadcast %17 : vector<2x1x128xf32> to vector<2x64x128xf32>
    %19 = arith.mulf %16, %18 : vector<2x64x128xf32>
    %20 = vector.shape_cast %19 : vector<2x64x128xf32> to vector<128x128xf32>
    %c0_7 = arith.constant 0 : index
    %c0_8 = arith.constant 0 : index
    %21 = vector.load %arg4[%c0_7, %c0_8] : memref<680x128xf32, #tpu.memory_space<vmem>>, vector<512x128xf32>
    %c512 = arith.constant 512 : index
    %c0_9 = arith.constant 0 : index
    %22 = vector.load %arg4[%c512, %c0_9] : memref<680x128xf32, #tpu.memory_space<vmem>>, vector<128x128xf32>
    %c640 = arith.constant 640 : index
    %c0_10 = arith.constant 0 : index
    %23 = vector.load %arg4[%c640, %c0_10] : memref<680x128xf32, #tpu.memory_space<vmem>>, vector<40x128xf32>
    %cst_11 = arith.constant dense<0.000000e+00> : vector<128x128xf32>
    %24 = tpu.matmul %20, %22, %cst_11 {dimension_numbers = #tpu.dot_dimension_numbers<[1], [0], [0], [1], [0, 0, 1, 1], [], []>} : vector<128x128xf32>, vector<128x128xf32>, vector<128x128xf32> -> vector<128x128xf32>
    %cst_12 = arith.constant dense<0.000000e+00> : vector<512x128xf32>
    %25 = tpu.matmul %21, %24, %cst_12 {dimension_numbers = #tpu.dot_dimension_numbers<[1], [0], [0], [1], [0, 0, 1, 1], [], []>} : vector<512x128xf32>, vector<128x128xf32>, vector<512x128xf32> -> vector<512x128xf32>
    %c0_13 = arith.constant 0 : index
    %c0_14 = arith.constant 0 : index
    %26 = vector.load %arg2[%c0_13, %c0_14] : memref<512x40xf32, #tpu.memory_space<vmem>>, vector<512x40xf32>
    %cst_15 = arith.constant dense<0.000000e+00> : vector<512x128xf32>
    %27 = tpu.matmul %26, %23, %cst_15 {dimension_numbers = #tpu.dot_dimension_numbers<[1], [0], [0], [1], [0, 0, 1, 1], [], []>} : vector<512x40xf32>, vector<40x128xf32>, vector<512x128xf32> -> vector<512x128xf32>
    %28 = arith.addf %25, %27 : vector<512x128xf32>
    %c0_16 = arith.constant 0 : index
    %c0_17 = arith.constant 0 : index
    %29 = vector.load %arg5[%c0_16, %c0_17] : memref<512x128xf32, #tpu.memory_space<vmem>>, vector<512x128xf32>
    tpu.vector_store %arg5[%c0_16, %c0_17], %28 {strides = array<i32>} : memref<512x128xf32, #tpu.memory_space<vmem>>, vector<512x128xf32>,
    return
  }
  func.func @transform_0(%arg0: i32) -> (i32, i32) {
    %c0_i32 = arith.constant 0 : i32
    %c0_i32_0 = arith.constant 0 : i32
    %c0_i32_1 = arith.constant 0 : i32
    return %c0_i32, %c0_i32_0 : i32, i32
  }
  func.func @transform_1(%arg0: i32) -> (i32, i32) {
    %c0_i32 = arith.constant 0 : i32
    %c0_i32_0 = arith.constant 0 : i32
    %c0_i32_1 = arith.constant 0 : i32
    return %c0_i32, %c0_i32_0 : i32, i32
  }
  func.func @transform_2(%arg0: i32) -> (i32, i32) {
    %c0_i32 = arith.constant 0 : i32
    %c0_i32_0 = arith.constant 0 : i32
    %c0_i32_1 = arith.constant 0 : i32
    return %c0_i32, %c0_i32_0 : i32, i32
  }
  func.func @transform_3(%arg0: i32) -> (i32, i32) {
    %c0_i32 = arith.constant 0 : i32
    %c0_i32_0 = arith.constant 0 : i32
    %c0_i32_1 = arith.constant 0 : i32
    return %c0_i32, %c0_i32_0 : i32, i32
  }
  func.func @transform_4(%arg0: i32) -> (i32, i32) {
    %c0_i32 = arith.constant 0 : i32
    %c0_i32_0 = arith.constant 0 : i32
    %c0_i32_1 = arith.constant 0 : i32
    return %c0_i32, %c0_i32_0 : i32, i32
  }
}

</mosaic_0001>

<bundles_post_ra>
// kernel: exp2_lraspp_forward.1
= control target key start
LH: loop header
LB: loop body
LE: loop exit
PB: predicated region body
PF: predicated region fallthrough
CT: control target
= control target key end

     0   :  { %vm100_vm0 = vcmask 1040384   ;;  %v2262_v3 = vmov 0.0   ;;  %vm51_vm1 = vcmask 531456   ;;  %vm635_vm2 = vcmask 326656   ;;  %s3389_s2 = inlined_call_operand.vmem [shape: f32[65,256], index: 2, kind: input, shape index: {}]   ;;  %s3390_s0 = inlined_call_operand.vmem [shape: f32[128,65], index: 0, kind: input, shape index: {}]   ;;  %s3391_s3 = inlined_call_operand.vmem [shape: f32[680,128], index: 3, kind: input, shape index: {}]   ;;  %s3392_s1 = inlined_call_operand.vmem [shape: f32[512,40], index: 1, kind: input, shape index: {}]   ;;  %s3393_s4 = inlined_call_operand.vmem [shape: f32[512,128], index: 4, kind: output, shape index: {}]  }
   0x1   :  { %v50_v0 = vld [vmem:[%s3389_s2 + $0x88] sm:$0x1]  ;;  %v49_v1 = vld [vmem:[%s3389_s2 + $0x80] sm:$0x1]  ;;  %v48_v2 = vld [vmem:[%s3389_s2 + $0x78] sm:$0xff]  ;;  %171 = vmatprep.mubr.f32.mxu0 %v2262_v3 }
   0x2   :  { %1666 = vmatprep.subr.msk.mxu0 %vm100_vm0, %v50_v0  ;;  %v47_v4 = vld [vmem:[%s3389_s2 + $0x70] sm:$0xff]  ;;  %v46_v5 = vld [vmem:[%s3389_s2 + $0x68] sm:$0xff]  ;;  %v45_v6 = vld [vmem:[%s3389_s2 + $0x60] sm:$0xff] }
   0x3   :  { %1667 = vmatpush1.msk.msra.mxu0 %vm100_vm0, %v49_v1  ;;  %v44_v7 = vld [vmem:[%s3389_s2 + $0x58] sm:$0xff]  ;;  %v43_v8 = vld [vmem:[%s3389_s2 + $0x50] sm:$0xff]  ;;  %v42_v9 = vld [vmem:[%s3389_s2 + $0x48] sm:$0xff] }
   0x4   :  { %123 = vmatprep.subr.mxu0 %v48_v2  ;;  %v41_v10 = vld [vmem:[%s3389_s2 + $0x40] sm:$0xff]  ;;  %v40_v11 = vld [vmem:[%s3389_s2 + $0x38] sm:$0xff]  ;;  %v39_v12 = vld [vmem:[%s3389_s2 + $0x30] sm:$0xff] }
   0x5   :  { %124 = vmatpush1.msra.mxu0 %v47_v4  ;;  %v38_v13 = vld [vmem:[%s3389_s2 + $0x28] sm:$0xff]  ;;  %v37_v14 = vld [vmem:[%s3389_s2 + $0x20] sm:$0xff]  ;;  %v36_v15 = vld [vmem:[%s3389_s2 + $0x18] sm:$0xff] }
   0x6   :  { %125 = vmatprep.subr.mxu0 %v46_v5  ;;  %v35_v16 = vld [vmem:[%s3389_s2 + $0x10] sm:$0xff]  ;;  %v34_v17 = vld [vmem:[%s3389_s2 + $0x8] sm:$0xff]  ;;  %v33_v18 = vld [vmem:[%s3389_s2] sm:$0xff] }
   0x7   :  { %126 = vmatpush1.msra.mxu0 %v45_v6  ;;  %v17_v19 = vld [vmem:[%s3390_s0] sm:$0xff]  ;;  %v18_v20 = vld [vmem:[%s3390_s0 + $0x8] sm:$0xff]  ;;  %v19_v21 = vld [vmem:[%s3390_s0 + $0x10] sm:$0xff] }
   0x8   :  { %127 = vmatprep.subr.mxu0 %v44_v7  ;;  %v20_v22 = vld [vmem:[%s3390_s0 + $0x18] sm:$0xff]  ;;  %v21_v23 = vld [vmem:[%s3390_s0 + $0x20] sm:$0xff]  ;;  %v22_v24 = vld [vmem:[%s3390_s0 + $0x28] sm:$0xff] }
   0x9   :  { %128 = vmatpush1.msra.mxu0 %v43_v8  ;;  %v23_v25 = vld [vmem:[%s3390_s0 + $0x30] sm:$0xff]  ;;  %v24_v26 = vld [vmem:[%s3390_s0 + $0x38] sm:$0xff]  ;;  %v25_v27 = vld [vmem:[%s3390_s0 + $0x40] sm:$0xff] }
   0xa   :  { %129 = vmatprep.subr.mxu0 %v42_v9  ;;  %v26_v28 = vld [vmem:[%s3390_s0 + $0x48] sm:$0xff]  ;;  %v27_v29 = vld [vmem:[%s3390_s0 + $0x50] sm:$0xff]  ;;  %v28_v30 = vld [vmem:[%s3390_s0 + $0x58] sm:$0xff] }
   0xb   :  { %130 = vmatpush1.msra.mxu0 %v41_v10  ;;  %v29_v31 = vld [vmem:[%s3390_s0 + $0x60] sm:$0xff]  ;;  %v30_v32 = vld [vmem:[%s3390_s0 + $0x68] sm:$0xff]  ;;  %v31_v33 = vld [vmem:[%s3390_s0 + $0x70] sm:$0xff] }
   0xc   :  { %131 = vmatprep.subr.mxu0 %v40_v11  ;;  %v32_v34 = vld [vmem:[%s3390_s0 + $0x78] sm:$0xff]  ;;  %v419_v36 = vld [vmem:[%s3391_s3 + $0x270] sm:$0xff]  ;;  %v418_v37 = vld [vmem:[%s3391_s3 + $0x268] sm:$0xff] }
   0xd   :  { %132 = vmatpush1.msra.mxu0 %v39_v12  ;;  %v420_v35 = vld [vmem:[%s3391_s3 + $0x278] sm:$0xff]  ;;  %v417_v38 = vld [vmem:[%s3391_s3 + $0x260] sm:$0xff]  ;;  %v415_v40 = vld [vmem:[%s3391_s3 + $0x250] sm:$0xff] }
   0xe   :  { %133 = vmatprep.subr.mxu0 %v38_v13  ;;  %1931 = vmatprep.subr.mxu1 %v420_v35  ;;  %v416_v39 = vld [vmem:[%s3391_s3 + $0x258] sm:$0xff]  ;;  %v414_v41 = vld [vmem:[%s3391_s3 + $0x248] sm:$0xff]  ;;  %v413_v42 = vld [vmem:[%s3391_s3 + $0x240] sm:$0xff] }
   0xf   :  { %134 = vmatpush1.msra.mxu0 %v37_v14  ;;  %1932 = vmatpush3.msra.mxu1 %v420_v35  ;;  %v412_v43 = vld [vmem:[%s3391_s3 + $0x238] sm:$0xff]  ;;  %v411_v44 = vld [vmem:[%s3391_s3 + $0x230] sm:$0xff]  ;;  %v410_v45 = vld [vmem:[%s3391_s3 + $0x228] sm:$0xff] }
  0x10   :  { %135 = vmatprep.subr.mxu0 %v36_v15  ;;  %1933 = vmatprep.subr.mxu1 %v419_v36  ;;  %v409_v46 = vld [vmem:[%s3391_s3 + $0x220] sm:$0xff]  ;;  %v408_v47 = vld [vmem:[%s3391_s3 + $0x218] sm:$0xff]  ;;  %v407_v48 = vld [vmem:[%s3391_s3 + $0x210] sm:$0xff] }
  0x11   :  { %136 = vmatpush1.msra.mxu0 %v35_v16  ;;  %1934 = vmatpush3.msra.mxu1 %v419_v36  ;;  %v406_v49 = vld [vmem:[%s3391_s3 + $0x208] sm:$0xff]  ;;  %v405_v50 = vld [vmem:[%s3391_s3 + $0x200] sm:$0xff] }
  0x12   :  { %137 = vmatprep.subr.mxu0 %v34_v17  ;;  %1935 = vmatprep.subr.mxu1 %v418_v37 }
  0x13   :  { %138 = vmatpush1.msra.mxu0 %v33_v18  ;;  %1936 = vmatpush3.msra.mxu1 %v418_v37 }
  0x14   :  { %1668 = vmatmul.mubr.msk.f32.vlgmr.msra.gmra.mxu0 %vm51_vm1, %v17_v19  ;;  %1937 = vmatprep.subr.mxu1 %v417_v38 }
  0x15   :  { %177 = vmatprep.mubr.f32.mxu0 %v2262_v3  ;;  %1938 = vmatpush3.msra.mxu1 %v417_v38 }
  0x16   :  { %1939 = vmatprep.subr.mxu1 %v416_v39 }
  0x17   :  { %1940 = vmatpush3.msra.mxu1 %v416_v39 }
  0x18   :  { %1669 = vmatmul.mubr.msk.f32.gmra.mxu0 %vm51_vm1, %v18_v20  ;;  %1941 = vmatprep.subr.mxu1 %v415_v40 }
  0x19   :  { %183 = vmatprep.mubr.f32.mxu0 %v2262_v3  ;;  %1942 = vmatpush3.msra.mxu1 %v415_v40 }
  0x1a   :  { %1943 = vmatprep.subr.mxu1 %v414_v41 }
  0x1b   :  { %1944 = vmatpush3.msra.mxu1 %v414_v41 }
  0x1c   :  { %1670 = vmatmul.mubr.msk.f32.gmra.mxu0 %vm51_vm1, %v19_v21  ;;  %1945 = vmatprep.subr.mxu1 %v413_v42 }
  0x1d   :  { %189 = vmatprep.mubr.f32.mxu0 %v2262_v3  ;;  %1946 = vmatpush3.msra.mxu1 %v413_v42 }
  0x1e   :  { %1947 = vmatprep.subr.mxu1 %v412_v43 }
  0x1f   :  { %1948 = vmatpush3.msra.mxu1 %v412_v43 }
  0x20   :  { %1671 = vmatmul.mubr.msk.f32.gmra.mxu0 %vm51_vm1, %v20_v22  ;;  %1949 = vmatprep.subr.mxu1 %v411_v44 }
  0x21   :  { %195 = vmatprep.mubr.f32.mxu0 %v2262_v3  ;;  %1950 = vmatpush3.msra.mxu1 %v411_v44 }
  0x22   :  { %1951 = vmatprep.subr.mxu1 %v410_v45 }
  0x23   :  { %1952 = vmatpush3.msra.mxu1 %v410_v45 }
  0x24   :  { %1672 = vmatmul.mubr.msk.f32.gmra.mxu0 %vm51_vm1, %v21_v23  ;;  %1953 = vmatprep.subr.mxu1 %v409_v46 }
  0x25   :  { %201 = vmatprep.mubr.f32.mxu0 %v2262_v3  ;;  %1954 = vmatpush3.msra.mxu1 %v409_v46 }
  0x26   :  { %1955 = vmatprep.subr.mxu1 %v408_v47 }
  0x27   :  { %1956 = vmatpush3.msra.mxu1 %v408_v47 }
  0x28   :  { %1673 = vmatmul.mubr.msk.f32.gmra.mxu0 %vm51_vm1, %v22_v24  ;;  %1957 = vmatprep.subr.mxu1 %v407_v48 }
  0x29   :  { %207 = vmatprep.mubr.f32.mxu0 %v2262_v3  ;;  %1958 = vmatpush3.msra.mxu1 %v407_v48 }
  0x2a   :  { %1959 = vmatprep.subr.mxu1 %v406_v49 }
  0x2b   :  { %1960 = vmatpush3.msra.mxu1 %v406_v49 }
  0x2c   :  { %1674 = vmatmul.mubr.msk.f32.gmra.mxu0 %vm51_vm1, %v23_v25  ;;  %1961 = vmatprep.subr.mxu1 %v405_v50 }
  0x2d   :  { %213 = vmatprep.mubr.f32.mxu0 %v2262_v3  ;;  %1962 = vmatpush3.msra.mxu1 %v405_v50 }
  0x30   :  { %1675 = vmatmul.mubr.msk.f32.gmra.mxu0 %vm51_vm1, %v24_v26 }
  0x31   :  { %219 = vmatprep.mubr.f32.mxu0 %v2262_v3 }
  0x34   :  { %1676 = vmatmul.mubr.msk.f32.gmra.mxu0 %vm51_vm1, %v25_v27 }
  0x35   :  { %225 = vmatprep.mubr.f32.mxu0 %v2262_v3 }
  0x38   :  { %1677 = vmatmul.mubr.msk.f32.gmra.mxu0 %vm51_vm1, %v26_v28 }
  0x39   :  { %231 = vmatprep.mubr.f32.mxu0 %v2262_v3 }
  0x3c   :  { %1678 = vmatmul.mubr.msk.f32.gmra.mxu0 %vm51_vm1, %v27_v29 }
  0x3d   :  { %237 = vmatprep.mubr.f32.mxu0 %v2262_v3 }
  0x40   :  { %1679 = vmatmul.mubr.msk.f32.gmra.mxu0 %vm51_vm1, %v28_v30 }
  0x41   :  { %243 = vmatprep.mubr.f32.mxu0 %v2262_v3 }
  0x44   :  { %1680 = vmatmul.mubr.msk.f32.gmra.mxu0 %vm51_vm1, %v29_v31 }
  0x45   :  { %249 = vmatprep.mubr.f32.mxu0 %v2262_v3 }
  0x48   :  { %1681 = vmatmul.mubr.msk.f32.gmra.mxu0 %vm51_vm1, %v30_v32 }
  0x49   :  { %255 = vmatprep.mubr.f32.mxu0 %v2262_v3 }
  0x4c   :  { %1682 = vmatmul.mubr.msk.f32.gmra.mxu0 %vm51_vm1, %v31_v33 }
  0x4d   :  { %261 = vmatprep.mubr.f32.mxu0 %v2262_v3 }
  0x50   :  { %1683 = vmatmul.mubr.msk.f32.gmra.mxu0 %vm51_vm1, %v32_v34 }
  0xd4   :  { %v2470_v51 = vpop.f32.mrf.mxu0 }
  0xd5   :  { %v268_v49 = vmax.f32 %v2470_v51, 0.0 }
  0xd6   :  { %v175_v52 = vpop.f32.mrf.mxu0 }
  0xd8   :  { %v2472_v53 = vpop.f32.mrf.mxu0 }
  0xd9   :  { %v269_v50 = vmax.f32 %v2472_v53, 0.0 }
  0xda   :  { %v181_v54 = vpop.f32.mrf.mxu0 }
  0xdb   :  { %v284_v61 = vadd.f32 %v181_v54, %v175_v52 }
  0xdc   :  { %v2474_v55 = vpop.f32.mrf.mxu0 }
  0xde   :  { %v187_v56 = vpop.f32.mrf.mxu0 }
  0xdf   :  { %v285_v63 = vadd.f32 %v284_v61, %v187_v56  ;;  %v270_v56 = vmax.f32 %v2474_v55, 0.0 }
  0xe0   :  { %v2476_v57 = vpop.f32.mrf.mxu0 }
  0xe2   :  { %v193_v58 = vpop.f32.mrf.mxu0 }
  0xe3   :  { %v286_v1 = vadd.f32 %v285_v63, %v193_v58 }
  0xe4   :  { %v2478_v59 = vpop.f32.mrf.mxu0 }
  0xe6   :  { %v199_v60 = vpop.f32.mrf.mxu0 }
  0xe7   :  { %v287_v3 = vadd.f32 %v286_v1, %v199_v60  ;;  %v272_v1 = vmax.f32 %v2478_v59, 0.0 }
  0xe8   :  { %v2480_v62 = vpop.f32.mrf.mxu0 }
  0xe9   :  { %v273_v53 = vmax.f32 %v2480_v62, 0.0 }
  0xea   :  { %v205_v0 = vpop.f32.mrf.mxu0 }
  0xeb   :  { %v288_v5 = vadd.f32 %v287_v3, %v205_v0  ;;  %v271_v0 = vmax.f32 %v2476_v57, 0.0 }
  0xec   :  { %v2482_v2 = vpop.f32.mrf.mxu0 }
  0xee   :  { %v211_v4 = vpop.f32.mrf.mxu0 }
  0xef   :  { %v289_v7 = vadd.f32 %v288_v5, %v211_v4  ;;  %v274_v4 = vmax.f32 %v2482_v2, 0.0 }
  0xf0   :  { %v2484_v6 = vpop.f32.mrf.mxu0 }
  0xf2   :  { %v217_v8 = vpop.f32.mrf.mxu0 }
  0xf3   :  { %v290_v9 = vadd.f32 %v289_v7, %v217_v8  ;;  %v275_v7 = vmax.f32 %v2484_v6, 0.0 }
  0xf4   :  { %v2486_v10 = vpop.f32.mrf.mxu0 }
  0xf5   :  { %v291_v11 = vrot.slane %v290_v9, 4  ;;  %v276_v59 = vmax.f32 %v2486_v10, 0.0 }
  0xf6   :  { %v223_v12 = vpop.f32.mrf.mxu0 }
  0xf7   :  { %v292_v13 = vadd.f32 %v291_v11, %v290_v9 }
  0xf8   :  { %v2488_v14 = vpop.f32.mrf.mxu0 }
  0xf9   :  { %v293_v15 = vrot.slane %v292_v13, 2  ;;  %v277_v11 = vmax.f32 %v2488_v14, 0.0 }
  0xfa   :  { %v229_v16 = vpop.f32.mrf.mxu0 }
  0xfb   :  { %v294_v17 = vadd.f32 %v293_v15, %v292_v13  ;;  %v297_v28 = vadd.f32 %v229_v16, %v223_v12 }
  0xfc   :  { %v2490_v18 = vpop.f32.mrf.mxu0 }
  0xfd   :  { %v295_v19 = vrot.slane %v294_v17, 1  ;;  %v278_v12 = vmax.f32 %v2490_v18, 0.0 }
  0xfe   :  { %v235_v20 = vpop.f32.mrf.mxu0 }
  0xff   :  { %v296_v21 = vadd.f32 %v295_v19, %v294_v17  ;;  %v298_v30 = vadd.f32 %v297_v28, %v235_v20  ;;  %v571_v28 = vld [vmem:[%s3392_s1] sm:$0xff] }
 0x100   :  { %v2492_v22 = vpop.f32.mrf.mxu0 }
 0x101   :  { %v1684_v23 = vmul.f32 -0.015625, %v296_v21  ;;  %v279_v6 = vmax.f32 %v2492_v22, 0.0  ;;  %v425_v22 = vld [vmem:[%s3391_s3 + $0x2a0] sm:$0xff] }
 0x102   :  { %v241_v24 = vpop.f32.mrf.mxu0  ;;  %1987 = vmatprep.subr.mxu1 %v425_v22 }
 0x103   :  { %v315_v25 = vmul.f32 1.442695, %v1684_v23  ;;  %v299_v32 = vadd.f32 %v298_v30, %v241_v24  ;;  %v424_v24 = vld [vmem:[%s3391_s3 + $0x298] sm:$0xff]  ;;  %v573_v30 = vld [vmem:[%s3392_s1 + $0x10] sm:$0xff] }
 0x104   :  { %v2494_v26 = vpop.f32.mrf.mxu0 }
 0x105   :  { %2254 = vpow2.f32 %v315_v25  ;;  %v280_v16 = vmax.f32 %v2494_v26, 0.0  ;;  %v423_v25 = vld [vmem:[%s3391_s3 + $0x290] sm:$0xff]  ;;  %v422_v26 = vld [vmem:[%s3391_s3 + $0x288] sm:$0xff] }
 0x106   :  { %v247_v27 = vpop.f32.mrf.mxu0 }
 0x107   :  { %v300_v34 = vadd.f32 %v299_v32, %v247_v27  ;;  %v421_v27 = vld [vmem:[%s3391_s3 + $0x280] sm:$0xff] }
 0x108   :  { %v2496_v29 = vpop.f32.mrf.mxu0  ;;  %v575_v32 = vld [vmem:[%s3392_s1 + $0x20] sm:$0xff] }
 0x109   :  { %v281_v20 = vmax.f32 %v2496_v29, 0.0  ;;  %v572_v29 = vld [vmem:[%s3392_s1 + $0x8] sm:$0xff] }
 0x10a   :  { %v253_v31 = vpop.f32.mrf.mxu0 }
 0x10b   :  { %v301_v36 = vadd.f32 %v300_v34, %v253_v31  ;;  %v574_v31 = vld [vmem:[%s3392_s1 + $0x18] sm:$0xff]  ;;  %v577_v34 = vld [vmem:[%s3392_s1 + $0x30] sm:$0xff] }
 0x10c   :  { %v2498_v33 = vpop.f32.mrf.mxu0 }
 0x10d   :  { %v282_v10 = vmax.f32 %v2498_v33, 0.0  ;;  %v576_v33 = vld [vmem:[%s3392_s1 + $0x28] sm:$0xff] }
 0x10e   :  { %v259_v35 = vpop.f32.mrf.mxu0 }
 0x10f   :  { %v302_v38 = vadd.f32 %v301_v36, %v259_v35  ;;  %v578_v35 = vld [vmem:[%s3392_s1 + $0x38] sm:$0xff]  ;;  %v579_v36 = vld [vmem:[%s3392_s1 + $0x40] sm:$0xff] }
 0x110   :  { %v2500_v37 = vpop.f32.mrf.mxu0 }
 0x111   :  { %v283_v21 = vmax.f32 %v2500_v37, 0.0  ;;  %v580_v37 = vld [vmem:[%s3392_s1 + $0x48] sm:$0xff] }
 0x112   :  { %v2255_v39 = vpop.eup %2254  ;;  %v265_v40 = vpop.f32.mrf.mxu0 }
 0x113   :  { %v319_v41 = vadd.f32 1.0, %v2255_v39  ;;  %v303_v42 = vadd.f32 %v302_v38, %v265_v40  ;;  %v581_v38 = vld [vmem:[%s3392_s1 + $0x50] sm:$0xff]  ;;  %v582_v39 = vld [vmem:[%s3392_s1 + $0x58] sm:$0xff]  ;;  %v583_v40 = vld [vmem:[%s3392_s1 + $0x60] sm:$0xff] }
 0x115   :  { %2256 = vrcp.f32 %v319_v41  ;;  %v304_v43 = vrot.slane %v303_v42, 4  ;;  %v341_v41 = vld [vmem:[%s3391_s3] sm:$0xff] }
 0x116   :  { %2125 = vmatprep.mubr.f32.mxu0 %v341_v41 }
 0x117   :  { %v305_v44 = vadd.f32 %v304_v43, %v303_v42  ;;  %v584_v42 = vld [vmem:[%s3392_s1 + $0x68] sm:$0xff]  ;;  %v585_v43 = vld [vmem:[%s3392_s1 + $0x70] sm:$0xff] }
 0x119   :  { %v306_v45 = vrot.slane %v305_v44, 2 }
 0x11b   :  { %v307_v46 = vadd.f32 %v306_v45, %v305_v44  ;;  %v586_v44 = vld [vmem:[%s3392_s1 + $0x78] sm:$0xff]  ;;  %v587_v45 = vld [vmem:[%s3392_s1 + $0x80] sm:$0xff] }
 0x11d   :  { %v308_v47 = vrot.slane %v307_v46, 1 }
 0x11f   :  { %v309_v48 = vadd.f32 %v308_v47, %v307_v46  ;;  %v588_v46 = vld [vmem:[%s3392_s1 + $0x88] sm:$0xff]  ;;  %v589_v47 = vld [vmem:[%s3392_s1 + $0x90] sm:$0xff] }
 0x121   :  { %v1685_v52 = vmul.f32 -0.015625, %v309_v48  ;;  %v590_v48 = vld [vmem:[%s3392_s1 + $0x98] sm:$0xff] }
 0x122   :  { %v2257_v54 = vpop.eup %2256 }
 0x123   :  { %v317_v58 = vmul.f32 1.442695, %v1685_v52  ;;  %v325_v60 = vmul.f32 %v2257_v54, %v268_v49  ;;  %v326_v61 = vmul.f32 %v2257_v54, %v269_v50  ;;  %v327_v63 = vmul.f32 %v2257_v54, %v270_v56  ;;  %v591_v49 = vld [vmem:[%s3392_s1 + $0xa0] sm:$0xff]  ;;  %v592_v50 = vld [vmem:[%s3392_s1 + $0xa8] sm:$0xff]  ;;  %v593_v52 = vld [vmem:[%s3392_s1 + $0xb0] sm:$0xff] }
 0x124   :  { %v328_v3 = vmul.f32 %v2257_v54, %v271_v0  ;;  %v329_v51 = vmul.f32 %v2257_v54, %v272_v1  ;;  %v330_v55 = vmul.f32 %v2257_v54, %v273_v53  ;;  %v331_v5 = vmul.f32 %v2257_v54, %v274_v4  ;;  %v595_v56 = vld [vmem:[%s3392_s1 + $0xc0] sm:$0xff]  ;;  %v600_v0 = vld [vmem:[%s3392_s1 + $0xe8] sm:$0xff]  ;;  %v601_v1 = vld [vmem:[%s3392_s1 + $0xf0] sm:$0xff] }
 0x125   :  { %2258 = vpow2.f32 %v317_v58  ;;  %1963 = vmatprep.mubr.f32.mxu1 %v325_v60  ;;  %v332_v8 = vmul.f32 %v2257_v54, %v275_v7  ;;  %v594_v54 = vld [vmem:[%s3392_s1 + $0xb8] sm:$0xff]  ;;  %v596_v58 = vld [vmem:[%s3392_s1 + $0xc8] sm:$0xff]  ;;  %v597_v60 = vld [vmem:[%s3392_s1 + $0xd0] sm:$0xff] }
 0x126   :  { %1964 = vmatmul.mubr.f32.vlgmr.msra.gmra.mxu1 %v326_v61  ;;  %v598_v61 = vld [vmem:[%s3392_s1 + $0xd8] sm:$0xff]  ;;  %v604_v53 = vld [vmem:[%s3392_s1 + $0x108] sm:$0xff]  ;;  %v605_v4 = vld [vmem:[%s3392_s1 + $0x110] sm:$0xff] }
 0x127   :  { %1966 = vmatprep.mubr.f32.mxu1 %v327_v63  ;;  %1988 = vmatpush3.msra.mxu1 %v425_v22  ;;  %v599_v63 = vld [vmem:[%s3392_s1 + $0xe0] sm:$0xff]  ;;  %v608_v7 = vld [vmem:[%s3392_s1 + $0x128] sm:$0xff] }
 0x128   :  { %1989 = vmatprep.subr.mxu1 %v424_v24 }
 0x129   :  { %1990 = vmatpush3.msra.mxu1 %v424_v24  ;;  %v623_v24 = vld [vmem:[%s3392_s1 + $0x1a0] sm:$0xff] }
 0x12a   :  { %1967 = vmatmul.mubr.f32.gmra.mxu1 %v328_v3  ;;  %1991 = vmatprep.subr.mxu1 %v423_v25  ;;  %v602_v3 = vld [vmem:[%s3392_s1 + $0xf8] sm:$0xff] }
 0x12b   :  { %1969 = vmatprep.mubr.f32.mxu1 %v329_v51  ;;  %1992 = vmatpush3.msra.mxu1 %v423_v25  ;;  %v603_v51 = vld [vmem:[%s3392_s1 + $0x100] sm:$0xff]  ;;  %v624_v25 = vld [vmem:[%s3392_s1 + $0x1a8] sm:$0xff] }
 0x12c   :  { %1993 = vmatprep.subr.mxu1 %v422_v26 }
 0x12d   :  { %1994 = vmatpush3.msra.mxu1 %v422_v26 }
 0x12e   :  { %1970 = vmatmul.mubr.f32.gmra.mxu1 %v330_v55  ;;  %1995 = vmatprep.subr.mxu1 %v421_v27  ;;  %v606_v55 = vld [vmem:[%s3392_s1 + $0x118] sm:$0xff] }
 0x12f   :  { %1972 = vmatprep.mubr.f32.mxu1 %v331_v5  ;;  %1996 = vmatpush3.msra.mxu1 %v421_v27  ;;  %v607_v5 = vld [vmem:[%s3392_s1 + $0x120] sm:$0xff]  ;;  %v625_v27 = vld [vmem:[%s3392_s1 + $0x1b0] sm:$0xff] }
 0x132   :  { %v2259_v57 = vpop.eup %2258  ;;  %1973 = vmatmul.mubr.f32.gmra.mxu1 %v332_v8  ;;  %v609_v8 = vld [vmem:[%s3392_s1 + $0x130] sm:$0xff] }
 0x133   :  { %v320_v9 = vadd.f32 1.0, %v2259_v57  ;;  %v610_v57 = vld [vmem:[%s3392_s1 + $0x138] sm:$0xff] }
 0x135   :  { %2260 = vrcp.f32 %v320_v9 }
 0x142   :  { %v2261_v62 = vpop.eup %2260 }
 0x143   :  { %v333_v2 = vmul.f32 %v2261_v62, %v276_v59  ;;  %v334_v13 = vmul.f32 %v2261_v62, %v277_v11  ;;  %v335_v15 = vmul.f32 %v2261_v62, %v278_v12  ;;  %v336_v17 = vmul.f32 %v2261_v62, %v279_v6  ;;  %v611_v59 = vld [vmem:[%s3392_s1 + $0x140] sm:$0xff]  ;;  %v612_v11 = vld [vmem:[%s3392_s1 + $0x148] sm:$0xff]  ;;  %v613_v12 = vld [vmem:[%s3392_s1 + $0x150] sm:$0xff] }
 0x144   :  { %v337_v19 = vmul.f32 %v2261_v62, %v280_v16  ;;  %v338_v14 = vmul.f32 %v2261_v62, %v281_v20  ;;  %v339_v18 = vmul.f32 %v2261_v62, %v282_v10  ;;  %v340_v23 = vmul.f32 %v2261_v62, %v283_v21  ;;  %v616_v6 = vld [vmem:[%s3392_s1 + $0x168] sm:$0xff]  ;;  %v619_v10 = vld [vmem:[%s3392_s1 + $0x180] sm:$0xff]  ;;  %v621_v21 = vld [vmem:[%s3392_s1 + $0x190] sm:$0xff] }
 0x145   :  { %1975 = vmatprep.mubr.f32.mxu1 %v333_v2  ;;  %v614_v2 = vld [vmem:[%s3392_s1 + $0x158] sm:$0xff] }
 0x146   :  { %1976 = vmatmul.mubr.f32.gmra.mxu1 %v334_v13 }
 0x147   :  { %1978 = vmatprep.mubr.f32.mxu1 %v335_v15  ;;  %v615_v15 = vld [vmem:[%s3392_s1 + $0x160] sm:$0xff] }
 0x14a   :  { %1979 = vmatmul.mubr.f32.gmra.mxu1 %v336_v17  ;;  %v617_v17 = vld [vmem:[%s3392_s1 + $0x170] sm:$0xff] }
 0x14b   :  { %1981 = vmatprep.mubr.f32.mxu1 %v337_v19  ;;  %v618_v19 = vld [vmem:[%s3392_s1 + $0x178] sm:$0xff] }
 0x14e   :  { %1982 = vmatmul.mubr.f32.gmra.mxu1 %v338_v14  ;;  %v620_v14 = vld [vmem:[%s3392_s1 + $0x188] sm:$0xff] }
 0x14f   :  { %1984 = vmatprep.mubr.f32.mxu1 %v339_v18 }
 0x152   :  { %1985 = vmatmul.mubr.f32.gmra.mxu1 %v340_v23  ;;  %v622_v23 = vld [vmem:[%s3392_s1 + $0x198] sm:$0xff] }
 0x153   :  { %1997 = vmatprep.mubr.msk.f32.mxu1 %vm635_vm2, %v571_v28 }
 0x156   :  { %1998 = vmatmul.mubr.msk.f32.vlgmr.msra.gmra.mxu1 %vm635_vm2, %v572_v29  ;;  %v626_v29 = vld [vmem:[%s3392_s1 + $0x1b8] sm:$0xff] }
 0x157   :  { %2000 = vmatprep.mubr.msk.f32.mxu1 %vm635_vm2, %v573_v30 }
 0x15a   :  { %2001 = vmatmul.mubr.msk.f32.gmra.mxu1 %vm635_vm2, %v574_v31  ;;  %v627_v31 = vld [vmem:[%s3392_s1 + $0x1c0] sm:$0xff] }
 0x15b   :  { %2003 = vmatprep.mubr.msk.f32.mxu1 %vm635_vm2, %v575_v32 }
 0x15e   :  { %2004 = vmatmul.mubr.msk.f32.gmra.mxu1 %vm635_vm2, %v576_v33  ;;  %v628_v33 = vld [vmem:[%s3392_s1 + $0x1c8] sm:$0xff] }
 0x15f   :  { %2006 = vmatprep.mubr.msk.f32.mxu1 %vm635_vm2, %v577_v34 }
 0x162   :  { %2007 = vmatmul.mubr.msk.f32.gmra.mxu1 %vm635_vm2, %v578_v35  ;;  %v629_v35 = vld [vmem:[%s3392_s1 + $0x1d0] sm:$0xff] }
 0x163   :  { %2009 = vmatprep.mubr.msk.f32.mxu1 %vm635_vm2, %v579_v36 }
 0x166   :  { %2010 = vmatmul.mubr.msk.f32.gmra.mxu1 %vm635_vm2, %v580_v37  ;;  %v630_v37 = vld [vmem:[%s3392_s1 + $0x1d8] sm:$0xff] }
 0x167   :  { %2012 = vmatprep.mubr.msk.f32.mxu1 %vm635_vm2, %v581_v38 }
 0x16a   :  { %2013 = vmatmul.mubr.msk.f32.gmra.mxu1 %vm635_vm2, %v582_v39  ;;  %v631_v39 = vld [vmem:[%s3392_s1 + $0x1e0] sm:$0xff] }
 0x16b   :  { %2015 = vmatprep.mubr.msk.f32.mxu1 %vm635_vm2, %v583_v40 }
 0x16e   :  { %2016 = vmatmul.mubr.msk.f32.gmra.mxu1 %vm635_vm2, %v584_v42  ;;  %v342_v42 = vld [vmem:[%s3391_s3 + $0x8] sm:$0xff] }
 0x16f   :  { %2018 = vmatprep.mubr.msk.f32.mxu1 %vm635_vm2, %v585_v43  ;;  %v632_v43 = vld [vmem:[%s3392_s1 + $0x1e8] sm:$0xff] }
 0x172   :  { %2019 = vmatmul.mubr.msk.f32.gmra.mxu1 %vm635_vm2, %v586_v44  ;;  %v343_v44 = vld [vmem:[%s3391_s3 + $0x10] sm:$0xff] }
 0x173   :  { %2021 = vmatprep.mubr.msk.f32.mxu1 %vm635_vm2, %v587_v45  ;;  %v633_v45 = vld [vmem:[%s3392_s1 + $0x1f0] sm:$0xff] }
 0x176   :  { %2022 = vmatmul.mubr.msk.f32.gmra.mxu1 %vm635_vm2, %v588_v46  ;;  %v344_v46 = vld [vmem:[%s3391_s3 + $0x18] sm:$0xff] }
 0x177   :  { %2024 = vmatprep.mubr.msk.f32.mxu1 %vm635_vm2, %v589_v47  ;;  %v634_v47 = vld [vmem:[%s3392_s1 + $0x1f8] sm:$0xff] }
 0x17a   :  { %2025 = vmatmul.mubr.msk.f32.gmra.mxu1 %vm635_vm2, %v590_v48  ;;  %v345_v48 = vld [vmem:[%s3391_s3 + $0x20] sm:$0xff] }
 0x17b   :  { %2027 = vmatprep.mubr.msk.f32.mxu1 %vm635_vm2, %v591_v49  ;;  %v401_v49 = vld [vmem:[%s3391_s3 + $0x1e0] sm:$0xff] }
 0x17e   :  { %2028 = vmatmul.mubr.msk.f32.gmra.mxu1 %vm635_vm2, %v592_v50  ;;  %v346_v50 = vld [vmem:[%s3391_s3 + $0x28] sm:$0xff] }
 0x17f   :  { %2030 = vmatprep.mubr.msk.f32.mxu1 %vm635_vm2, %v593_v52  ;;  %v402_v52 = vld [vmem:[%s3391_s3 + $0x1e8] sm:$0xff] }
 0x182   :  { %2031 = vmatmul.mubr.msk.f32.gmra.mxu1 %vm635_vm2, %v594_v54  ;;  %v347_v54 = vld [vmem:[%s3391_s3 + $0x30] sm:$0xff] }
 0x183   :  { %2033 = vmatprep.mubr.msk.f32.mxu1 %vm635_vm2, %v595_v56  ;;  %v403_v56 = vld [vmem:[%s3391_s3 + $0x1f0] sm:$0xff] }
 0x186   :  { %2034 = vmatmul.mubr.msk.f32.gmra.mxu1 %vm635_vm2, %v596_v58  ;;  %v348_v58 = vld [vmem:[%s3391_s3 + $0x38] sm:$0xff] }
 0x187   :  { %2036 = vmatprep.mubr.msk.f32.mxu1 %vm635_vm2, %v597_v60  ;;  %v404_v60 = vld [vmem:[%s3391_s3 + $0x1f8] sm:$0xff] }
 0x18a   :  { %2037 = vmatmul.mubr.msk.f32.gmra.mxu1 %vm635_vm2, %v598_v61  ;;  %v349_v61 = vld [vmem:[%s3391_s3 + $0x40] sm:$0xff] }
 0x18b   :  { %2039 = vmatprep.mubr.msk.f32.mxu1 %vm635_vm2, %v599_v63  ;;  %v350_v63 = vld [vmem:[%s3391_s3 + $0x48] sm:$0xff] }
 0x18e   :  { %2040 = vmatmul.mubr.msk.f32.gmra.mxu1 %vm635_vm2, %v600_v0  ;;  %v351_v0 = vld [vmem:[%s3391_s3 + $0x50] sm:$0xff] }
 0x18f   :  { %2042 = vmatprep.mubr.msk.f32.mxu1 %vm635_vm2, %v601_v1  ;;  %v352_v1 = vld [vmem:[%s3391_s3 + $0x58] sm:$0xff] }
 0x192   :  { %2043 = vmatmul.mubr.msk.f32.gmra.mxu1 %vm635_vm2, %v602_v3  ;;  %v353_v3 = vld [vmem:[%s3391_s3 + $0x60] sm:$0xff] }
 0x193   :  { %2045 = vmatprep.mubr.msk.f32.mxu1 %vm635_vm2, %v603_v51  ;;  %v354_v51 = vld [vmem:[%s3391_s3 + $0x68] sm:$0xff] }
 0x196   :  { %2046 = vmatmul.mubr.msk.f32.gmra.mxu1 %vm635_vm2, %v604_v53  ;;  %v355_v53 = vld [vmem:[%s3391_s3 + $0x70] sm:$0xff] }
 0x197   :  { %2048 = vmatprep.mubr.msk.f32.mxu1 %vm635_vm2, %v605_v4  ;;  %v356_v4 = vld [vmem:[%s3391_s3 + $0x78] sm:$0xff] }
 0x19a   :  { %2049 = vmatmul.mubr.msk.f32.gmra.mxu1 %vm635_vm2, %v606_v55  ;;  %v357_v55 = vld [vmem:[%s3391_s3 + $0x80] sm:$0xff] }
 0x19b   :  { %2051 = vmatprep.mubr.msk.f32.mxu1 %vm635_vm2, %v607_v5  ;;  %v358_v5 = vld [vmem:[%s3391_s3 + $0x88] sm:$0xff] }
 0x19e   :  { %2052 = vmatmul.mubr.msk.f32.gmra.mxu1 %vm635_vm2, %v608_v7  ;;  %v359_v7 = vld [vmem:[%s3391_s3 + $0x90] sm:$0xff] }
 0x19f   :  { %2054 = vmatprep.mubr.msk.f32.mxu1 %vm635_vm2, %v609_v8  ;;  %v360_v8 = vld [vmem:[%s3391_s3 + $0x98] sm:$0xff] }
 0x1a2   :  { %2055 = vmatmul.mubr.msk.f32.gmra.mxu1 %vm635_vm2, %v610_v57  ;;  %v361_v57 = vld [vmem:[%s3391_s3 + $0xa0] sm:$0xff] }
 0x1a3   :  { %2057 = vmatprep.mubr.msk.f32.mxu1 %vm635_vm2, %v611_v59  ;;  %v362_v59 = vld [vmem:[%s3391_s3 + $0xa8] sm:$0xff] }
 0x1a6   :  { %2058 = vmatmul.mubr.msk.f32.gmra.mxu1 %vm635_vm2, %v612_v11  ;;  %v363_v11 = vld [vmem:[%s3391_s3 + $0xb0] sm:$0xff] }
 0x1a7   :  { %2060 = vmatprep.mubr.msk.f32.mxu1 %vm635_vm2, %v613_v12  ;;  %v364_v12 = vld [vmem:[%s3391_s3 + $0xb8] sm:$0xff] }
 0x1aa   :  { %2061 = vmatmul.mubr.msk.f32.gmra.mxu1 %vm635_vm2, %v614_v2  ;;  %v365_v2 = vld [vmem:[%s3391_s3 + $0xc0] sm:$0xff] }
 0x1ab   :  { %2063 = vmatprep.mubr.msk.f32.mxu1 %vm635_vm2, %v615_v15  ;;  %v366_v15 = vld [vmem:[%s3391_s3 + $0xc8] sm:$0xff] }
 0x1ae   :  { %2064 = vmatmul.mubr.msk.f32.gmra.mxu1 %vm635_vm2, %v616_v6  ;;  %v367_v6 = vld [vmem:[%s3391_s3 + $0xd0] sm:$0xff] }
 0x1af   :  { %2066 = vmatprep.mubr.msk.f32.mxu1 %vm635_vm2, %v617_v17 }
 0x1b2   :  { %2067 = vmatmul.mubr.msk.f32.gmra.mxu1 %vm635_vm2, %v618_v19  ;;  %v368_v19 = vld [vmem:[%s3391_s3 + $0xd8] sm:$0xff] }
 0x1b3   :  { %2069 = vmatprep.mubr.msk.f32.mxu1 %vm635_vm2, %v619_v10 }
 0x1b6   :  { %2070 = vmatmul.mubr.msk.f32.gmra.mxu1 %vm635_vm2, %v620_v14 }
 0x1b7   :  { %2072 = vmatprep.mubr.msk.f32.mxu1 %vm635_vm2, %v621_v21  ;;  %v371_v21 = vld [vmem:[%s3391_s3 + $0xf0] sm:$0xff] }
 0x1ba   :  { %2073 = vmatmul.mubr.msk.f32.gmra.mxu1 %vm635_vm2, %v622_v23 }
 0x1bb   :  { %2075 = vmatprep.mubr.msk.f32.mxu1 %vm635_vm2, %v623_v24  ;;  %v372_v24 = vld [vmem:[%s3391_s3 + $0xf8] sm:$0xff] }
 0x1be   :  { %2076 = vmatmul.mubr.msk.f32.gmra.mxu1 %vm635_vm2, %v624_v25  ;;  %v373_v25 = vld [vmem:[%s3391_s3 + $0x100] sm:$0xff] }
 0x1bf   :  { %2078 = vmatprep.mubr.msk.f32.mxu1 %vm635_vm2, %v625_v27 }
 0x1c2   :  { %2079 = vmatmul.mubr.msk.f32.gmra.mxu1 %vm635_vm2, %v626_v29  ;;  %v375_v29 = vld [vmem:[%s3391_s3 + $0x110] sm:$0xff] }
 0x1c3   :  { %2081 = vmatprep.mubr.msk.f32.mxu1 %vm635_vm2, %v627_v31 }
 0x1c6   :  { %2082 = vmatmul.mubr.msk.f32.gmra.mxu1 %vm635_vm2, %v628_v33  ;;  %v377_v33 = vld [vmem:[%s3391_s3 + $0x120] sm:$0xff] }
 0x1c7   :  { %2084 = vmatprep.mubr.msk.f32.mxu1 %vm635_vm2, %v629_v35 }
 0x1ca   :  { %2085 = vmatmul.mubr.msk.f32.gmra.mxu1 %vm635_vm2, %v630_v37  ;;  %v379_v37 = vld [vmem:[%s3391_s3 + $0x130] sm:$0xff] }
 0x1cb   :  { %2087 = vmatprep.mubr.msk.f32.mxu1 %vm635_vm2, %v631_v39 }
 0x1ce   :  { %2088 = vmatmul.mubr.msk.f32.gmra.mxu1 %vm635_vm2, %v632_v43 }
 0x1cf   :  { %2090 = vmatprep.mubr.msk.f32.mxu1 %vm635_vm2, %v633_v45  ;;  %v383_v45 = vld [vmem:[%s3391_s3 + $0x150] sm:$0xff] }
 0x1d2   :  { %2091 = vmatmul.mubr.msk.f32.gmra.mxu1 %vm635_vm2, %v634_v47 }
 0x1d3   :  { %2215 = vmatprep.mubr.f32.mxu1 %v401_v49  ;;  %v385_v49 = vld [vmem:[%s3391_s3 + $0x160] sm:$0xff] }
 0x1e6   :  { %v2696_v9 = vpop.f32.mrf.mxu1 }
 0x1e8   :  { %v2706_v62 = vpop.f32.mrf.mxu1 }
 0x1ea   :  { %v2716_v13 = vpop.f32.mrf.mxu1 }
 0x1ec   :  { %v2726_v16 = vpop.f32.mrf.mxu1 }
 0x1ee   :  { %v2736_v20 = vpop.f32.mrf.mxu1 }
 0x1f0   :  { %v2746_v18 = vpop.f32.mrf.mxu1 }
 0x1f2   :  { %v1974_v22 = vpop.f32.mrf.mxu1 }
 0x1f4   :  { %v522_v26 = vpop.f32.mrf.mxu1 }
 0x206   :  { %v1977_v28 = vpop.f32.mrf.mxu1 }
 0x208   :  { %v532_v30 = vpop.f32.mrf.mxu1 }
 0x20a   :  { %v1980_v32 = vpop.f32.mrf.mxu1 }
 0x20c   :  { %v542_v34 = vpop.f32.mrf.mxu1 }
 0x20e   :  { %v1983_v36 = vpop.f32.mrf.mxu1 }
 0x210   :  { %v552_v38 = vpop.f32.mrf.mxu1 }
 0x212   :  { %v1986_v40 = vpop.f32.mrf.mxu1 }
 0x213   :  { %2093 = vmatprep.subr.mxu0 %v1986_v40  ;;  %2221 = vmatprep.subr.mxu1 %v1986_v40 }
 0x214   :  { %v562_v41 = vpop.f32.mrf.mxu1  ;;  %2094 = vmatpush3.msra.mxu0 %v1986_v40  ;;  %2237 = vmatpush3.msra.mxu1 %v1986_v40  ;;  %v380_v40 = vld [vmem:[%s3391_s3 + $0x138] sm:$0xff] }
 0x215   :  { %2095 = vmatprep.subr.mxu0 %v562_v41  ;;  %2222 = vmatprep.subr.mxu1 %v562_v41 }
 0x216   :  { %2096 = vmatpush3.msra.mxu0 %v562_v41  ;;  %2238 = vmatpush3.msra.mxu1 %v562_v41  ;;  %v381_v41 = vld [vmem:[%s3391_s3 + $0x140] sm:$0xff] }
 0x217   :  { %2097 = vmatprep.subr.mxu0 %v1983_v36  ;;  %2223 = vmatprep.subr.mxu1 %v1983_v36 }
 0x218   :  { %2098 = vmatpush3.msra.mxu0 %v1983_v36  ;;  %2239 = vmatpush3.msra.mxu1 %v1983_v36  ;;  %v378_v36 = vld [vmem:[%s3391_s3 + $0x128] sm:$0xff] }
 0x219   :  { %2099 = vmatprep.subr.mxu0 %v552_v38  ;;  %2224 = vmatprep.subr.mxu1 %v552_v38 }
 0x21a   :  { %2100 = vmatpush3.msra.mxu0 %v552_v38  ;;  %2240 = vmatpush3.msra.mxu1 %v552_v38 }
 0x21b   :  { %2101 = vmatprep.subr.mxu0 %v1980_v32  ;;  %2225 = vmatprep.subr.mxu1 %v1980_v32 }
 0x21c   :  { %2102 = vmatpush3.msra.mxu0 %v1980_v32  ;;  %2241 = vmatpush3.msra.mxu1 %v1980_v32  ;;  %v376_v32 = vld [vmem:[%s3391_s3 + $0x118] sm:$0xff] }
 0x21d   :  { %2103 = vmatprep.subr.mxu0 %v542_v34  ;;  %2226 = vmatprep.subr.mxu1 %v542_v34 }
 0x21e   :  { %2104 = vmatpush3.msra.mxu0 %v542_v34  ;;  %2242 = vmatpush3.msra.mxu1 %v542_v34 }
 0x21f   :  { %2105 = vmatprep.subr.mxu0 %v1977_v28  ;;  %2227 = vmatprep.subr.mxu1 %v1977_v28 }
 0x220   :  { %2106 = vmatpush3.msra.mxu0 %v1977_v28  ;;  %2243 = vmatpush3.msra.mxu1 %v1977_v28  ;;  %v374_v28 = vld [vmem:[%s3391_s3 + $0x108] sm:$0xff] }
 0x221   :  { %2107 = vmatprep.subr.mxu0 %v532_v30  ;;  %2228 = vmatprep.subr.mxu1 %v532_v30 }
 0x222   :  { %2108 = vmatpush3.msra.mxu0 %v532_v30  ;;  %2244 = vmatpush3.msra.mxu1 %v532_v30 }
 0x223   :  { %2109 = vmatprep.subr.mxu0 %v1974_v22  ;;  %2229 = vmatprep.subr.mxu1 %v1974_v22 }
 0x224   :  { %2110 = vmatpush3.msra.mxu0 %v1974_v22  ;;  %2245 = vmatpush3.msra.mxu1 %v1974_v22 }
 0x225   :  { %2111 = vmatprep.subr.mxu0 %v522_v26  ;;  %2230 = vmatprep.subr.mxu1 %v522_v26 }
 0x226   :  { %2112 = vmatpush3.msra.mxu0 %v522_v26  ;;  %2246 = vmatpush3.msra.mxu1 %v522_v26 }
 0x227   :  { %2113 = vmatprep.subr.mxu0 %v2736_v20  ;;  %2231 = vmatprep.subr.mxu1 %v2736_v20 }
 0x228   :  { %2114 = vmatpush3.msra.mxu0 %v2736_v20  ;;  %2247 = vmatpush3.msra.mxu1 %v2736_v20  ;;  %v369_v20 = vld [vmem:[%s3391_s3 + $0xe0] sm:$0xff] }
 0x229   :  { %2115 = vmatprep.subr.mxu0 %v2746_v18  ;;  %2232 = vmatprep.subr.mxu1 %v2746_v18 }
 0x22a   :  { %2116 = vmatpush3.msra.mxu0 %v2746_v18  ;;  %2248 = vmatpush3.msra.mxu1 %v2746_v18  ;;  %v370_v18 = vld [vmem:[%s3391_s3 + $0xe8] sm:$0xff] }
 0x22b   :  { %2117 = vmatprep.subr.mxu0 %v2716_v13  ;;  %2233 = vmatprep.subr.mxu1 %v2716_v13 }
 0x22c   :  { %2118 = vmatpush3.msra.mxu0 %v2716_v13  ;;  %2249 = vmatpush3.msra.mxu1 %v2716_v13 }
 0x22d   :  { %2119 = vmatprep.subr.mxu0 %v2726_v16  ;;  %2234 = vmatprep.subr.mxu1 %v2726_v16 }
 0x22e   :  { %2120 = vmatpush3.msra.mxu0 %v2726_v16  ;;  %2250 = vmatpush3.msra.mxu1 %v2726_v16 }
 0x22f   :  { %2121 = vmatprep.subr.mxu0 %v2696_v9  ;;  %2235 = vmatprep.subr.mxu1 %v2696_v9 }
 0x230   :  { %2122 = vmatpush3.msra.mxu0 %v2696_v9  ;;  %2251 = vmatpush3.msra.mxu1 %v2696_v9  ;;  %v2900_v9 = vpop.f32.mrf.mxu1 }
 0x231   :  { %2123 = vmatprep.subr.mxu0 %v2706_v62  ;;  %2236 = vmatprep.subr.mxu1 %v2706_v62 }
 0x232   :  { %2124 = vmatpush3.msra.mxu0 %v2706_v62  ;;  %2252 = vmatpush3.msra.mxu1 %v2706_v62  ;;  %v2908_v62 = vpop.f32.mrf.mxu1 }
 0x233   :  { %2126 = vmatmul.mubr.f32.vlgmr.msra.gmra.mxu0 %v342_v42  ;;  %2216 = vmatmul.mubr.f32.vlgmr.msra.gmra.mxu1 %v402_v52 }
 0x234   :  { %2128 = vmatprep.mubr.f32.mxu0 %v343_v44  ;;  %2218 = vmatprep.mubr.f32.mxu1 %v403_v56  ;;  %v2916_v13 = vpop.f32.mrf.mxu1  ;;  %v382_v44 = vld [vmem:[%s3391_s3 + $0x148] sm:$0xff]  ;;  %v387_v56 = vld [vmem:[%s3391_s3 + $0x170] sm:$0xff] }
 0x236   :  { %v2924_v16 = vpop.f32.mrf.mxu1 }
 0x237   :  { %2129 = vmatmul.mubr.f32.gmra.mxu0 %v344_v46  ;;  %2219 = vmatmul.mubr.f32.gmra.mxu1 %v404_v60 }
 0x238   :  { %2131 = vmatprep.mubr.f32.mxu0 %v345_v48  ;;  %v2926_v17 = vpop.f32.mrf.mxu1  ;;  %v384_v48 = vld [vmem:[%s3391_s3 + $0x158] sm:$0xff] }
 0x23a   :  { %v2934_v10 = vpop.f32.mrf.mxu1 }
 0x23b   :  { %2132 = vmatmul.mubr.f32.gmra.mxu0 %v346_v50 }
 0x23c   :  { %2134 = vmatprep.mubr.f32.mxu0 %v347_v54  ;;  %v2936_v14 = vpop.f32.mrf.mxu1  ;;  %v386_v54 = vld [vmem:[%s3391_s3 + $0x168] sm:$0xff] }
 0x23e   :  { %v2944_v23 = vpop.f32.mrf.mxu1 }
 0x23f   :  { %2135 = vmatmul.mubr.f32.gmra.mxu0 %v348_v58 }
 0x240   :  { %2137 = vmatprep.mubr.f32.mxu0 %v349_v61  ;;  %v2946_v22 = vpop.f32.mrf.mxu1  ;;  %v388_v61 = vld [vmem:[%s3391_s3 + $0x178] sm:$0xff] }
 0x242   :  { %v2954_v26 = vpop.f32.mrf.mxu1 }
 0x243   :  { %2138 = vmatmul.mubr.f32.gmra.mxu0 %v350_v63  ;;  %v389_v63 = vld [vmem:[%s3391_s3 + $0x180] sm:$0xff] }
 0x244   :  { %2140 = vmatprep.mubr.f32.mxu0 %v351_v0  ;;  %v2956_v27 = vpop.f32.mrf.mxu1 }
 0x246   :  { %v2964_v30 = vpop.f32.mrf.mxu1 }
 0x247   :  { %2141 = vmatmul.mubr.f32.gmra.mxu0 %v352_v1 }
 0x248   :  { %2143 = vmatprep.mubr.f32.mxu0 %v353_v3  ;;  %v2966_v31 = vpop.f32.mrf.mxu1  ;;  %v390_v3 = vld [vmem:[%s3391_s3 + $0x188] sm:$0xff] }
 0x24a   :  { %v2974_v34 = vpop.f32.mrf.mxu1 }
 0x24b   :  { %2144 = vmatmul.mubr.f32.gmra.mxu0 %v354_v51  ;;  %v391_v51 = vld [vmem:[%s3391_s3 + $0x190] sm:$0xff] }
 0x24c   :  { %2146 = vmatprep.mubr.f32.mxu0 %v355_v53  ;;  %v2976_v35 = vpop.f32.mrf.mxu1 }
 0x24e   :  { %v2984_v38 = vpop.f32.mrf.mxu1 }
 0x24f   :  { %2147 = vmatmul.mubr.f32.gmra.mxu0 %v356_v4 }
 0x250   :  { %2149 = vmatprep.mubr.f32.mxu0 %v357_v55  ;;  %v2986_v39 = vpop.f32.mrf.mxu1  ;;  %v392_v55 = vld [vmem:[%s3391_s3 + $0x198] sm:$0xff] }
 0x252   :  { %v2994_v42 = vpop.f32.mrf.mxu1 }
 0x253   :  { %2150 = vmatmul.mubr.f32.gmra.mxu0 %v358_v5  ;;  %v393_v5 = vld [vmem:[%s3391_s3 + $0x1a0] sm:$0xff] }
 0x254   :  { %2152 = vmatprep.mubr.f32.mxu0 %v359_v7  ;;  %v2996_v43 = vpop.f32.mrf.mxu1 }
 0x256   :  { %v3004_v46 = vpop.f32.mrf.mxu1 }
 0x257   :  { %2153 = vmatmul.mubr.f32.gmra.mxu0 %v360_v8 }
 0x258   :  { %2155 = vmatprep.mubr.f32.mxu0 %v361_v57  ;;  %v3006_v47 = vpop.f32.mrf.mxu1  ;;  %v394_v57 = vld [vmem:[%s3391_s3 + $0x1a8] sm:$0xff] }
 0x25a   :  { %v3014_v50 = vpop.f32.mrf.mxu1 }
 0x25b   :  { %2156 = vmatmul.mubr.f32.gmra.mxu0 %v362_v59  ;;  %v395_v59 = vld [vmem:[%s3391_s3 + $0x1b0] sm:$0xff] }
 0x25c   :  { %2158 = vmatprep.mubr.f32.mxu0 %v363_v11  ;;  %v3016_v52 = vpop.f32.mrf.mxu1 }
 0x25e   :  { %v3024_v58 = vpop.f32.mrf.mxu1 }
 0x25f   :  { %2159 = vmatmul.mubr.f32.gmra.mxu0 %v364_v12 }
 0x260   :  { %2161 = vmatprep.mubr.f32.mxu0 %v365_v2  ;;  %v3026_v60 = vpop.f32.mrf.mxu1  ;;  %v396_v2 = vld [vmem:[%s3391_s3 + $0x1b8] sm:$0xff] }
 0x262   :  { %v3034_v0 = vpop.f32.mrf.mxu1 }
 0x263   :  { %2162 = vmatmul.mubr.f32.gmra.mxu0 %v366_v15  ;;  %v397_v15 = vld [vmem:[%s3391_s3 + $0x1c0] sm:$0xff] }
 0x264   :  { %2164 = vmatprep.mubr.f32.mxu0 %v367_v6  ;;  %v3036_v1 = vpop.f32.mrf.mxu1 }
 0x266   :  { %v3044_v53 = vpop.f32.mrf.mxu1 }
 0x267   :  { %2165 = vmatmul.mubr.f32.gmra.mxu0 %v368_v19 }
 0x268   :  { %2167 = vmatprep.mubr.f32.mxu0 %v369_v20  ;;  %v3046_v4 = vpop.f32.mrf.mxu1  ;;  %v398_v20 = vld [vmem:[%s3391_s3 + $0x1c8] sm:$0xff] }
 0x26a   :  { %v3054_v7 = vpop.f32.mrf.mxu1 }
 0x26b   :  { %2168 = vmatmul.mubr.f32.gmra.mxu0 %v370_v18  ;;  %v399_v18 = vld [vmem:[%s3391_s3 + $0x1d0] sm:$0xff] }
 0x26c   :  { %2170 = vmatprep.mubr.f32.mxu0 %v371_v21  ;;  %v3056_v8 = vpop.f32.mrf.mxu1 }
 0x26e   :  { %v3064_v11 = vpop.f32.mrf.mxu1 }
 0x26f   :  { %2171 = vmatmul.mubr.f32.gmra.mxu0 %v372_v24 }
 0x270   :  { %2173 = vmatprep.mubr.f32.mxu0 %v373_v25  ;;  %v3066_v12 = vpop.f32.mrf.mxu1  ;;  %v400_v25 = vld [vmem:[%s3391_s3 + $0x1d8] sm:$0xff] }
 0x272   :  { %v3074_v6 = vpop.f32.mrf.mxu1 }
 0x273   :  { %2174 = vmatmul.mubr.f32.gmra.mxu0 %v374_v28 }
 0x274   :  { %2176 = vmatprep.mubr.f32.mxu0 %v375_v29  ;;  %v3076_v19 = vpop.f32.mrf.mxu1 }
 0x276   :  { %v3084_v21 = vpop.f32.mrf.mxu1 }
 0x277   :  { %2177 = vmatmul.mubr.f32.gmra.mxu0 %v376_v32 }
 0x278   :  { %2179 = vmatprep.mubr.f32.mxu0 %v377_v33  ;;  %v3086_v24 = vpop.f32.mrf.mxu1 }
 0x27a   :  { %v3091_v28 = vpop.f32.mrf.mxu1 }
 0x27b   :  { %2180 = vmatmul.mubr.f32.gmra.mxu0 %v378_v36 }
 0x27c   :  { %2182 = vmatprep.mubr.f32.mxu0 %v379_v37  ;;  %v3093_v29 = vpop.f32.mrf.mxu1 }
 0x27e   :  { %v3095_v32 = vpop.f32.mrf.mxu1 }
 0x27f   :  { %2183 = vmatmul.mubr.f32.gmra.mxu0 %v380_v40 }
 0x280   :  { %2185 = vmatprep.mubr.f32.mxu0 %v381_v41  ;;  %v3097_v33 = vpop.f32.mrf.mxu1 }
 0x282   :  { %v3099_v36 = vpop.f32.mrf.mxu1 }
 0x283   :  { %2186 = vmatmul.mubr.f32.gmra.mxu0 %v382_v44 }
 0x284   :  { %2188 = vmatprep.mubr.f32.mxu0 %v383_v45  ;;  %v3101_v37 = vpop.f32.mrf.mxu1 }
 0x286   :  { %v3103_v40 = vpop.f32.mrf.mxu1 }
 0x287   :  { %2189 = vmatmul.mubr.f32.gmra.mxu0 %v384_v48 }
 0x288   :  { %2191 = vmatprep.mubr.f32.mxu0 %v385_v49  ;;  %v3105_v41 = vpop.f32.mrf.mxu1 }
 0x28a   :  { %v3107_v44 = vpop.f32.mrf.mxu1 }
 0x28b   :  { %2192 = vmatmul.mubr.f32.gmra.mxu0 %v386_v54 }
 0x28c   :  { %2194 = vmatprep.mubr.f32.mxu0 %v387_v56  ;;  %v3109_v45 = vpop.f32.mrf.mxu1 }
 0x28e   :  { %v3111_v48 = vpop.f32.mrf.mxu1 }
 0x28f   :  { %2195 = vmatmul.mubr.f32.gmra.mxu0 %v388_v61 }
 0x290   :  { %2197 = vmatprep.mubr.f32.mxu0 %v389_v63  ;;  %v3113_v49 = vpop.f32.mrf.mxu1 }
 0x292   :  { %v3115_v54 = vpop.f32.mrf.mxu1 }
 0x293   :  { %2198 = vmatmul.mubr.f32.gmra.mxu0 %v390_v3 }
 0x294   :  { %2200 = vmatprep.mubr.f32.mxu0 %v391_v51  ;;  %v3117_v56 = vpop.f32.mrf.mxu1 }
 0x296   :  { %v3119_v61 = vpop.f32.mrf.mxu1 }
 0x297   :  { %2201 = vmatmul.mubr.f32.gmra.mxu0 %v392_v55 }
 0x298   :  { %2203 = vmatprep.mubr.f32.mxu0 %v393_v5  ;;  %v3121_v63 = vpop.f32.mrf.mxu1 }
 0x299   :  { %3394 = vst [vmem:[#allocation2_spill] sm:$0xff] %v3121_v63 }
 0x29a   :  { %v3123_v3 = vpop.f32.mrf.mxu1 }
 0x29b   :  { %2204 = vmatmul.mubr.f32.gmra.mxu0 %v394_v57  ;;  %3395 = vst [vmem:[#allocation3_spill] sm:$0xff] %v3123_v3 }
 0x29c   :  { %2206 = vmatprep.mubr.f32.mxu0 %v395_v59  ;;  %v3125_v51 = vpop.f32.mrf.mxu1 }
 0x29d   :  { %3396 = vst [vmem:[#allocation4_spill] sm:$0xff] %v3125_v51 }
 0x29e   :  { %v3127_v55 = vpop.f32.mrf.mxu1 }
 0x29f   :  { %2207 = vmatmul.mubr.f32.gmra.mxu0 %v396_v2  ;;  %3397 = vst [vmem:[#allocation5_spill] sm:$0xff] %v3127_v55 }
 0x2a0   :  { %2209 = vmatprep.mubr.f32.mxu0 %v397_v15  ;;  %v3129_v5 = vpop.f32.mrf.mxu1 }
 0x2a1   :  { %3398 = vst [vmem:[#allocation6_spill] sm:$0xff] %v3129_v5 }
 0x2a2   :  { %v3131_v57 = vpop.f32.mrf.mxu1 }
 0x2a3   :  { %2210 = vmatmul.mubr.f32.gmra.mxu0 %v398_v20  ;;  %3399 = vst [vmem:[#allocation7_spill] sm:$0xff] %v3131_v57 }
 0x2a4   :  { %2212 = vmatprep.mubr.f32.mxu0 %v399_v18  ;;  %v3133_v59 = vpop.f32.mrf.mxu1 }
 0x2a5   :  { %3400 = vst [vmem:[#allocation8_spill] sm:$0xff] %v3133_v59 }
 0x2a6   :  { %v3135_v2 = vpop.f32.mrf.mxu1 }
 0x2a7   :  { %2213 = vmatmul.mubr.f32.gmra.mxu0 %v400_v25  ;;  %3401 = vst [vmem:[#allocation9_spill] sm:$0xff] %v3135_v2 }
 0x2a8   :  { %v2089_v20 = vpop.f32.mrf.mxu1 }
 0x2aa   :  { %v1194_v63 = vpop.f32.mrf.mxu1 }
 0x2ac   :  { %v2092_v5 = vpop.f32.mrf.mxu1 }
 0x2ae   :  { %v1204_v57 = vpop.f32.mrf.mxu1 }
 0x2f3   :  { %v2127_v15 = vpop.f32.mrf.mxu0 }
 0x2f4   :  { %v1285_v18 = vadd.f32 %v2127_v15, %v2900_v9 }
 0x2f5   :  { %v1279_v25 = vpop.f32.mrf.mxu0 }
 0x2f6   :  { %1599 = vst [vmem:[%s3393_s4 + $0x8] sm:$0xff] %v1285_v18  ;;  %v1280_v55 = vadd.f32 %v1279_v25, %v2908_v62  ;;  %v2217_v18 = vpop.f32.mrf.mxu1 }
 0x2f7   :  { %v2130_v51 = vpop.f32.mrf.mxu0  ;;  %v1585_v25 = vadd.f32 %v2217_v18, %v2089_v20 }
 0x2f8   :  { %1598 = vst [vmem:[%s3393_s4] sm:$0xff] %v1280_v55  ;;  %v1295_v2 = vadd.f32 %v2130_v51, %v2916_v13  ;;  %v1579_v3 = vpop.f32.mrf.mxu1 }
 0x2f9   :  { %v1289_v59 = vpop.f32.mrf.mxu0  ;;  %1659 = vst [vmem:[%s3393_s4 + $0x1e8] sm:$0xff] %v1585_v25 }
 0x2fa   :  { %1601 = vst [vmem:[%s3393_s4 + $0x18] sm:$0xff] %v1295_v2  ;;  %v1290_v9 = vadd.f32 %v1289_v59, %v2924_v16  ;;  %v1580_v16 = vadd.f32 %v1579_v3, %v1194_v63  ;;  %v2220_v59 = vpop.f32.mrf.mxu1 }
 0x2fb   :  { %v2133_v15 = vpop.f32.mrf.mxu0  ;;  %v1595_v2 = vadd.f32 %v2220_v59, %v2092_v5 }
 0x2fc   :  { %1600 = vst [vmem:[%s3393_s4 + $0x10] sm:$0xff] %v1290_v9  ;;  %v1305_v62 = vadd.f32 %v2133_v15, %v2926_v17  ;;  %1658 = vst [vmem:[%s3393_s4 + $0x1e0] sm:$0xff] %v1580_v16 }
 0x2fd   :  { %v1299_v55 = vpop.f32.mrf.mxu0  ;;  %1661 = vst [vmem:[%s3393_s4 + $0x1f8] sm:$0xff] %v1595_v2 }
 0x2fe   :  { %1603 = vst [vmem:[%s3393_s4 + $0x28] sm:$0xff] %v1305_v62  ;;  %v1300_v13 = vadd.f32 %v1299_v55, %v2934_v10  ;;  %v1589_v10 = vpop.f32.mrf.mxu1 }
 0x2ff   :  { %v2136_v51 = vpop.f32.mrf.mxu0  ;;  %v1590_v3 = vadd.f32 %v1589_v10, %v1204_v57 }
 0x300   :  { %1602 = vst [vmem:[%s3393_s4 + $0x20] sm:$0xff] %v1300_v13  ;;  %v1315_v17 = vadd.f32 %v2136_v51, %v2936_v14 }
 0x301   :  { %v1309_v20 = vpop.f32.mrf.mxu0  ;;  %1660 = vst [vmem:[%s3393_s4 + $0x1f0] sm:$0xff] %v1590_v3 }
 0x302   :  { %1605 = vst [vmem:[%s3393_s4 + $0x38] sm:$0xff] %v1315_v17  ;;  %v1310_v63 = vadd.f32 %v1309_v20, %v2944_v23 }
 0x303   :  { %v2139_v9 = vpop.f32.mrf.mxu0 }
 0x304   :  { %1604 = vst [vmem:[%s3393_s4 + $0x30] sm:$0xff] %v1310_v63  ;;  %v1325_v14 = vadd.f32 %v2139_v9, %v2946_v22 }
 0x305   :  { %v1319_v5 = vpop.f32.mrf.mxu0 }
 0x306   :  { %1607 = vst [vmem:[%s3393_s4 + $0x48] sm:$0xff] %v1325_v14  ;;  %v1320_v23 = vadd.f32 %v1319_v5, %v2954_v26 }
 0x307   :  { %v2142_v15 = vpop.f32.mrf.mxu0 }
 0x308   :  { %1606 = vst [vmem:[%s3393_s4 + $0x40] sm:$0xff] %v1320_v23  ;;  %v1335_v57 = vadd.f32 %v2142_v15, %v2956_v27 }
 0x309   :  { %v1329_v18 = vpop.f32.mrf.mxu0 }
 0x30a   :  { %1609 = vst [vmem:[%s3393_s4 + $0x58] sm:$0xff] %v1335_v57  ;;  %v1330_v22 = vadd.f32 %v1329_v18, %v2964_v30 }
 0x30b   :  { %v2145_v62 = vpop.f32.mrf.mxu0 }
 0x30c   :  { %1608 = vst [vmem:[%s3393_s4 + $0x50] sm:$0xff] %v1330_v22  ;;  %v1345_v26 = vadd.f32 %v2145_v62, %v2966_v31 }
 0x30d   :  { %v1339_v25 = vpop.f32.mrf.mxu0 }
 0x30e   :  { %1611 = vst [vmem:[%s3393_s4 + $0x68] sm:$0xff] %v1345_v26  ;;  %v1340_v27 = vadd.f32 %v1339_v25, %v2974_v34 }
 0x30f   :  { %v2148_v55 = vpop.f32.mrf.mxu0 }
 0x310   :  { %1610 = vst [vmem:[%s3393_s4 + $0x60] sm:$0xff] %v1340_v27  ;;  %v1355_v30 = vadd.f32 %v2148_v55, %v2976_v35 }
 0x311   :  { %v1349_v13 = vpop.f32.mrf.mxu0 }
 0x312   :  { %1613 = vst [vmem:[%s3393_s4 + $0x78] sm:$0xff] %v1355_v30  ;;  %v1350_v31 = vadd.f32 %v1349_v13, %v2984_v38 }
 0x313   :  { %v2151_v16 = vpop.f32.mrf.mxu0 }
 0x314   :  { %1612 = vst [vmem:[%s3393_s4 + $0x70] sm:$0xff] %v1350_v31  ;;  %v1365_v34 = vadd.f32 %v2151_v16, %v2986_v39 }
 0x315   :  { %v1359_v51 = vpop.f32.mrf.mxu0 }
 0x316   :  { %1615 = vst [vmem:[%s3393_s4 + $0x88] sm:$0xff] %v1365_v34  ;;  %v1360_v35 = vadd.f32 %v1359_v51, %v2994_v42 }
 0x317   :  { %v2154_v59 = vpop.f32.mrf.mxu0 }
 0x318   :  { %1614 = vst [vmem:[%s3393_s4 + $0x80] sm:$0xff] %v1360_v35  ;;  %v1375_v38 = vadd.f32 %v2154_v59, %v2996_v43 }
 0x319   :  { %v1369_v17 = vpop.f32.mrf.mxu0 }
 0x31a   :  { %1617 = vst [vmem:[%s3393_s4 + $0x98] sm:$0xff] %v1375_v38  ;;  %v1370_v39 = vadd.f32 %v1369_v17, %v3004_v46 }
 0x31b   :  { %v2157_v2 = vpop.f32.mrf.mxu0 }
 0x31c   :  { %1616 = vst [vmem:[%s3393_s4 + $0x90] sm:$0xff] %v1370_v39  ;;  %v1385_v42 = vadd.f32 %v2157_v2, %v3006_v47 }
 0x31d   :  { %v1379_v20 = vpop.f32.mrf.mxu0 }
 0x31e   :  { %1619 = vst [vmem:[%s3393_s4 + $0xa8] sm:$0xff] %v1385_v42  ;;  %v1380_v43 = vadd.f32 %v1379_v20, %v3014_v50 }
 0x31f   :  { %v2160_v10 = vpop.f32.mrf.mxu0 }
 0x320   :  { %1618 = vst [vmem:[%s3393_s4 + $0xa0] sm:$0xff] %v1380_v43  ;;  %v1395_v46 = vadd.f32 %v2160_v10, %v3016_v52 }
 0x321   :  { %v1389_v63 = vpop.f32.mrf.mxu0 }
 0x322   :  { %1621 = vst [vmem:[%s3393_s4 + $0xb8] sm:$0xff] %v1395_v46  ;;  %v1390_v47 = vadd.f32 %v1389_v63, %v3024_v58 }
 0x323   :  { %v2163_v3 = vpop.f32.mrf.mxu0 }
 0x324   :  { %1620 = vst [vmem:[%s3393_s4 + $0xb0] sm:$0xff] %v1390_v47  ;;  %v1405_v50 = vadd.f32 %v2163_v3, %v3026_v60 }
 0x325   :  { %v1399_v9 = vpop.f32.mrf.mxu0 }
 0x326   :  { %1623 = vst [vmem:[%s3393_s4 + $0xc8] sm:$0xff] %v1405_v50  ;;  %v1400_v52 = vadd.f32 %v1399_v9, %v3034_v0  ;;  %v3405_v9 = vld [vmem:[#allocation5_spill] sm:$0xff] }
 0x327   :  { %v2166_v14 = vpop.f32.mrf.mxu0 }
 0x328   :  { %1622 = vst [vmem:[%s3393_s4 + $0xc0] sm:$0xff] %v1400_v52  ;;  %v1415_v58 = vadd.f32 %v2166_v14, %v3036_v1 }
 0x329   :  { %v1409_v5 = vpop.f32.mrf.mxu0 }
 0x32a   :  { %1625 = vst [vmem:[%s3393_s4 + $0xd8] sm:$0xff] %v1415_v58  ;;  %v1410_v60 = vadd.f32 %v1409_v5, %v3044_v53  ;;  %v3406_v58 = vld [vmem:[#allocation6_spill] sm:$0xff] }
 0x32b   :  { %v2169_v23 = vpop.f32.mrf.mxu0 }
 0x32c   :  { %1624 = vst [vmem:[%s3393_s4 + $0xd0] sm:$0xff] %v1410_v60  ;;  %v1425_v0 = vadd.f32 %v2169_v23, %v3046_v4  ;;  %v3407_v23 = vld [vmem:[#allocation7_spill] sm:$0xff] }
 0x32d   :  { %v1419_v15 = vpop.f32.mrf.mxu0 }
 0x32e   :  { %1627 = vst [vmem:[%s3393_s4 + $0xe8] sm:$0xff] %v1425_v0  ;;  %v1420_v1 = vadd.f32 %v1419_v15, %v3054_v7 }
 0x32f   :  { %v2172_v57 = vpop.f32.mrf.mxu0 }
 0x330   :  { %1626 = vst [vmem:[%s3393_s4 + $0xe0] sm:$0xff] %v1420_v1  ;;  %v1435_v53 = vadd.f32 %v2172_v57, %v3056_v8  ;;  %v3408_v1 = vld [vmem:[#allocation8_spill] sm:$0xff] }
 0x331   :  { %v1429_v18 = vpop.f32.mrf.mxu0 }
 0x332   :  { %1629 = vst [vmem:[%s3393_s4 + $0xf8] sm:$0xff] %v1435_v53  ;;  %v1430_v4 = vadd.f32 %v1429_v18, %v3064_v11  ;;  %v3409_v18 = vld [vmem:[#allocation9_spill] sm:$0xff] }
 0x333   :  { %v2175_v22 = vpop.f32.mrf.mxu0 }
 0x334   :  { %1628 = vst [vmem:[%s3393_s4 + $0xf0] sm:$0xff] %v1430_v4  ;;  %v1445_v7 = vadd.f32 %v2175_v22, %v3066_v12 }
 0x335   :  { %v1439_v62 = vpop.f32.mrf.mxu0 }
 0x336   :  { %1631 = vst [vmem:[%s3393_s4 + $0x108] sm:$0xff] %v1445_v7  ;;  %v1440_v8 = vadd.f32 %v1439_v62, %v3074_v6 }
 0x337   :  { %v2178_v26 = vpop.f32.mrf.mxu0 }
 0x338   :  { %1630 = vst [vmem:[%s3393_s4 + $0x100] sm:$0xff] %v1440_v8  ;;  %v1455_v11 = vadd.f32 %v2178_v26, %v3076_v19 }
 0x339   :  { %v1449_v25 = vpop.f32.mrf.mxu0 }
 0x33a   :  { %1633 = vst [vmem:[%s3393_s4 + $0x118] sm:$0xff] %v1455_v11  ;;  %v1450_v12 = vadd.f32 %v1449_v25, %v3084_v21 }
 0x33b   :  { %v2181_v27 = vpop.f32.mrf.mxu0 }
 0x33c   :  { %1632 = vst [vmem:[%s3393_s4 + $0x110] sm:$0xff] %v1450_v12  ;;  %v1465_v6 = vadd.f32 %v2181_v27, %v3086_v24 }
 0x33d   :  { %v1459_v55 = vpop.f32.mrf.mxu0 }
 0x33e   :  { %1635 = vst [vmem:[%s3393_s4 + $0x128] sm:$0xff] %v1465_v6  ;;  %v1460_v19 = vadd.f32 %v1459_v55, %v3091_v28 }
 0x33f   :  { %v2184_v30 = vpop.f32.mrf.mxu0 }
 0x340   :  { %1634 = vst [vmem:[%s3393_s4 + $0x120] sm:$0xff] %v1460_v19  ;;  %v1475_v21 = vadd.f32 %v2184_v30, %v3093_v29 }
 0x341   :  { %v1469_v13 = vpop.f32.mrf.mxu0 }
 0x342   :  { %1637 = vst [vmem:[%s3393_s4 + $0x138] sm:$0xff] %v1475_v21  ;;  %v1470_v24 = vadd.f32 %v1469_v13, %v3095_v32 }
 0x343   :  { %v2187_v31 = vpop.f32.mrf.mxu0 }
 0x344   :  { %1636 = vst [vmem:[%s3393_s4 + $0x130] sm:$0xff] %v1470_v24  ;;  %v1485_v28 = vadd.f32 %v2187_v31, %v3097_v33 }
 0x345   :  { %v1479_v16 = vpop.f32.mrf.mxu0 }
 0x346   :  { %1639 = vst [vmem:[%s3393_s4 + $0x148] sm:$0xff] %v1485_v28  ;;  %v1480_v29 = vadd.f32 %v1479_v16, %v3099_v36 }
 0x347   :  { %v2190_v34 = vpop.f32.mrf.mxu0 }
 0x348   :  { %1638 = vst [vmem:[%s3393_s4 + $0x140] sm:$0xff] %v1480_v29  ;;  %v1495_v32 = vadd.f32 %v2190_v34, %v3101_v37 }
 0x349   :  { %v1489_v51 = vpop.f32.mrf.mxu0 }
 0x34a   :  { %1641 = vst [vmem:[%s3393_s4 + $0x158] sm:$0xff] %v1495_v32  ;;  %v1490_v33 = vadd.f32 %v1489_v51, %v3103_v40 }
 0x34b   :  { %v2193_v35 = vpop.f32.mrf.mxu0 }
 0x34c   :  { %1640 = vst [vmem:[%s3393_s4 + $0x150] sm:$0xff] %v1490_v33  ;;  %v1505_v36 = vadd.f32 %v2193_v35, %v3105_v41 }
 0x34d   :  { %v1499_v59 = vpop.f32.mrf.mxu0 }
 0x34e   :  { %1643 = vst [vmem:[%s3393_s4 + $0x168] sm:$0xff] %v1505_v36  ;;  %v1500_v37 = vadd.f32 %v1499_v59, %v3107_v44 }
 0x34f   :  { %v2196_v38 = vpop.f32.mrf.mxu0 }
 0x350   :  { %1642 = vst [vmem:[%s3393_s4 + $0x160] sm:$0xff] %v1500_v37  ;;  %v1515_v40 = vadd.f32 %v2196_v38, %v3109_v45 }
 0x351   :  { %v1509_v17 = vpop.f32.mrf.mxu0 }
 0x352   :  { %1645 = vst [vmem:[%s3393_s4 + $0x178] sm:$0xff] %v1515_v40  ;;  %v1510_v41 = vadd.f32 %v1509_v17, %v3111_v48 }
 0x353   :  { %v2199_v39 = vpop.f32.mrf.mxu0 }
 0x354   :  { %1644 = vst [vmem:[%s3393_s4 + $0x170] sm:$0xff] %v1510_v41  ;;  %v1525_v44 = vadd.f32 %v2199_v39, %v3113_v49 }
 0x355   :  { %v1519_v2 = vpop.f32.mrf.mxu0 }
 0x356   :  { %1647 = vst [vmem:[%s3393_s4 + $0x188] sm:$0xff] %v1525_v44  ;;  %v1520_v45 = vadd.f32 %v1519_v2, %v3115_v54  ;;  %v3402_v54 = vld [vmem:[#allocation2_spill] sm:$0xff] }
 0x357   :  { %v2202_v42 = vpop.f32.mrf.mxu0 }
 0x358   :  { %1646 = vst [vmem:[%s3393_s4 + $0x180] sm:$0xff] %v1520_v45  ;;  %v1535_v48 = vadd.f32 %v2202_v42, %v3117_v56  ;;  %v3403_v56 = vld [vmem:[#allocation3_spill] sm:$0xff] }
 0x359   :  { %v1529_v20 = vpop.f32.mrf.mxu0 }
 0x35a   :  { %1649 = vst [vmem:[%s3393_s4 + $0x198] sm:$0xff] %v1535_v48  ;;  %v1530_v49 = vadd.f32 %v1529_v20, %v3119_v61  ;;  %v3404_v61 = vld [vmem:[#allocation4_spill] sm:$0xff] }
 0x35b   :  { %v2205_v43 = vpop.f32.mrf.mxu0 }
 0x35c   :  { %1648 = vst [vmem:[%s3393_s4 + $0x190] sm:$0xff] %v1530_v49  ;;  %v1545_v10 = vadd.f32 %v2205_v43, %v3402_v54 }
 0x35d   :  { %v1539_v46 = vpop.f32.mrf.mxu0 }
 0x35e   :  { %1651 = vst [vmem:[%s3393_s4 + $0x1a8] sm:$0xff] %v1545_v10  ;;  %v1540_v63 = vadd.f32 %v1539_v46, %v3403_v56 }
 0x35f   :  { %v2208_v47 = vpop.f32.mrf.mxu0 }
 0x360   :  { %1650 = vst [vmem:[%s3393_s4 + $0x1a0] sm:$0xff] %v1540_v63  ;;  %v1555_v3 = vadd.f32 %v2208_v47, %v3404_v61 }
 0x361   :  { %v1549_v50 = vpop.f32.mrf.mxu0 }
 0x362   :  { %1653 = vst [vmem:[%s3393_s4 + $0x1b8] sm:$0xff] %v1555_v3  ;;  %v1550_v52 = vadd.f32 %v1549_v50, %v3405_v9 }
 0x363   :  { %v2211_v14 = vpop.f32.mrf.mxu0 }
 0x364   :  { %1652 = vst [vmem:[%s3393_s4 + $0x1b0] sm:$0xff] %v1550_v52  ;;  %v1565_v5 = vadd.f32 %v2211_v14, %v3406_v58 }
 0x365   :  { %v1559_v60 = vpop.f32.mrf.mxu0 }
 0x366   :  { %1655 = vst [vmem:[%s3393_s4 + $0x1c8] sm:$0xff] %v1565_v5  ;;  %v1560_v0 = vadd.f32 %v1559_v60, %v3407_v23 }
 0x367   :  { %v2214_v15 = vpop.f32.mrf.mxu0 }
 0x368   :  { %1654 = vst [vmem:[%s3393_s4 + $0x1c0] sm:$0xff] %v1560_v0  ;;  %v1575_v57 = vadd.f32 %v2214_v15, %v3408_v1 }
 0x369   :  { %v1569_v53 = vpop.f32.mrf.mxu0 }
 0x36a   :  { %1657 = vst [vmem:[%s3393_s4 + $0x1d8] sm:$0xff] %v1575_v57  ;;  %v1570_v4 = vadd.f32 %v1569_v53, %v3409_v18 }
 0x36c   :  { %1656 = vst [vmem:[%s3393_s4 + $0x1d0] sm:$0xff] %v1570_v4 }

</bundles_post_ra>
